<compile_context>
chip_gen: v5e
topology: v5e:2x2
jax: 0.10.0
libtpu: 0.0.40
codegen_flags: <defaults>
</compile_context>

<pallas_src>
import functools

import jax
import jax.numpy as jnp
from jax.experimental import pallas as pl
from jax.experimental.pallas import tpu as pltpu


# --------------------------------------------------------------------------- #
# Kernel                                                                      #
# --------------------------------------------------------------------------- #
def _attention_kernel(x_ref, c_ref, wq_ref, wk_ref, wv_ref, wo_ref, bo_ref, o_ref,
                      *, heads, dim_head, block_b, n_q, n_kv, scale, compute_dtype):
    """One batch-block per grid step (fully batched over block_b and heads).

    x_ref : (block_b * n_q,  Dp)  flattened query tokens (compute dtype)
    c_ref : (block_b * n_kv, Dp)  flattened key/value tokens (compute dtype)
    wq_ref: (Dp, H*Dh)            q projection
    wk_ref: (Dp, H*Dh)            k projection
    wv_ref: (Dp, H*Dh)            v projection
    wo_ref: (H*Dh, Dp)            output projection
    bo_ref: (1, Dp)               output projection bias (f32)
    o_ref : (block_b * n_q, Dp)
    """
    cd = compute_dtype
    H, Dh = heads, dim_head
    inner = H * Dh

    x = x_ref[...]                       # (Bb*Nq,  Dp)
    c = c_ref[...]                       # (Bb*Nkv, Dp)

    # Whole-block projections on the MXU, f32 accumulation.  Softmax scale is
    # applied in f32 here (more accurate than folding into bf16 weights, free).
    q2d = jnp.dot(x, wq_ref[...], preferred_element_type=jnp.float32) * scale
    k2d = jnp.dot(c, wk_ref[...], preferred_element_type=jnp.float32)
    v2d = jnp.dot(c, wv_ref[...], preferred_element_type=jnp.float32)

    # 'b n (h d) -> (b h) n d' : one layout op per tensor (no per-b loop).
    # NOTE: dim_head < 128 means these reshapes are not (8,128)-tile aligned and
    # may materialize a VMEM copy, but they happen once per block, not per b.
    def to_heads(t2d, n):
        t = t2d.reshape(block_b, n, H, Dh).transpose(0, 2, 1, 3)
        return t.reshape(block_b * H, n, Dh).astype(cd)

    qh = to_heads(q2d, n_q)              # (Bb*H, Nq,  Dh)
    kh = to_heads(k2d, n_kv)             # (Bb*H, Nkv, Dh)
    vh = to_heads(v2d, n_kv)             # (Bb*H, Nkv, Dh)

    # Batched QK^T over all batch elements and heads at once.
    dots = jnp.einsum('bnd,bmd->bnm', qh, kh,
                      preferred_element_type=jnp.float32)           # (Bb*H, Nq, Nkv)

    # Numerically-stable softmax over keys, f32 math; EUP approx reciprocal.
    dots = dots - jnp.max(dots, axis=-1, keepdims=True)
    e = jnp.exp(dots)
    attn = e * pl.reciprocal(jnp.sum(e, axis=-1, keepdims=True), approx=True)

    out_h = jnp.einsum('bnm,bmd->bnd', attn.astype(cd), vh,
                       preferred_element_type=jnp.float32)          # (Bb*H, Nq, Dh)

    # '(b h) n d -> b n (h d)' then one big output projection (head-merge fused
    # into a single MXU matmul instead of per-head matmuls + sum).
    merged = out_h.reshape(block_b, H, n_q, Dh).transpose(0, 2, 1, 3)
    merged = merged.reshape(block_b * n_q, inner).astype(cd)

    final = jnp.dot(merged, wo_ref[...],
                    preferred_element_type=jnp.float32) + bo_ref[...]
    o_ref[...] = final.astype(o_ref.dtype)


# --------------------------------------------------------------------------- #
# Host-side sizing helpers                                                    #
# --------------------------------------------------------------------------- #
def _vmem_budget_bytes():
    """Per-chip VMEM budget (leave headroom for compiler scratch)."""
    cap = 64 << 20                       # conservative default (v7x per-TC VMEM)
    try:
        info = pltpu.get_tpu_info()
        cap = int(getattr(info, "vmem_capacity_bytes", cap))
    except Exception:
        pass
    return int(cap * 0.7)


def _dual_tensorcore():
    """True on chips exposing 2 TensorCores per device (v7x-style)."""
    try:
        kind = jax.devices()[0].device_kind
    except Exception:
        return False
    return "7" in kind


def _estimate_vmem_bytes(block_b, n_q, n_kv, d_pad, inner, heads,
                         cd_bytes, out_bytes, weights_bytes):
    rows_q, rows_kv = block_b * n_q, block_b * n_kv
    # double-buffered activation blocks (2 inputs + 1 output)
    io = 2 * d_pad * (rows_q * cd_bytes + rows_kv * cd_bytes + rows_q * out_bytes)
    # in-kernel intermediates (f32 projections + compute-dtype head-major copies,
    # f32 dots + compute-dtype attn, out_h/merged, final f32)
    inter = (rows_q + 2 * rows_kv) * inner * (4 + cd_bytes)
    inter += block_b * heads * n_q * n_kv * (4 + cd_bytes)
    inter += rows_q * inner * (4 + cd_bytes)
    inter += rows_q * d_pad * 4
    return io + inter + weights_bytes


def _choose_block_b(B, n_q, n_kv, d_pad, inner, heads, cd_bytes, out_bytes,
                    weights_bytes, vmem_budget, dual_core):
    """Largest batch-block that fits the VMEM budget; rows capped ~1024 (mem-bound
    tiling sweet spot); >=2 grid steps only forced on dual-TC chips."""
    legal = [bb for bb in range(1, B + 1)
             if B % bb == 0
             and (bb == B or ((bb * n_q) % 8 == 0 and (bb * n_kv) % 8 == 0))]
    row_target = 1024
    best = None
    for bb in legal:
        if bb * max(n_q, n_kv) > row_target:
            continue
        if dual_core and B >= 2 and bb > B // 2:
            continue
        if _estimate_vmem_bytes(bb, n_q, n_kv, d_pad, inner, heads, cd_bytes,
                                out_bytes, weights_bytes) > vmem_budget:
            continue
        best = bb
    if best is None:
        best = min(legal)                # always exists (bb = B is legal)
    return best


def _pad_last(a, target):
    pad = target - a.shape[-1]
    if pad == 0:
        return a
    return jnp.pad(a, [(0, 0)] * (a.ndim - 1) + [(0, pad)])


def _pad_first(a, target):
    pad = target - a.shape[0]
    if pad == 0:
        return a
    return jnp.pad(a, [(0, pad)] + [(0, 0)] * (a.ndim - 1))


# --------------------------------------------------------------------------- #
# pallas_call wrapper                                                         #
# --------------------------------------------------------------------------- #
def _call_pallas(x2d, c2d, wq, wk, wv, wo, bo, *, heads, dim_head, block_b,
                 grid_b, n_q, n_kv, d_pad, scale, compute_dtype, out_dtype,
                 vmem_limit, single_buffer_weights):
    inner = heads * dim_head

    def wspec(shape):
        kwargs = {}
        if single_buffer_weights:
            # Resident (constant index map) weights: single-buffer to halve VMEM.
            kwargs["pipeline_mode"] = pl.Buffered(1)
        return pl.BlockSpec(shape, lambda i: (0,) * len(shape), **kwargs)

    kernel = functools.partial(
        _attention_kernel, heads=heads, dim_head=dim_head, block_b=block_b,
        n_q=n_q, n_kv=n_kv, scale=scale, compute_dtype=compute_dtype)

    return pl.pallas_call(
        kernel,
        out_shape=jax.ShapeDtypeStruct((grid_b * block_b * n_q, d_pad), out_dtype),
        grid_spec=pltpu.PrefetchScalarGridSpec(
            num_scalar_prefetch=0,
            grid=(grid_b,),
            in_specs=[
                pl.BlockSpec((block_b * n_q, d_pad), lambda i: (i, 0)),   # queries
                pl.BlockSpec((block_b * n_kv, d_pad), lambda i: (i, 0)),  # context
                wspec((d_pad, inner)),                                     # wq
                wspec((d_pad, inner)),                                     # wk
                wspec((d_pad, inner)),                                     # wv
                wspec((inner, d_pad)),                                     # wo
                wspec((1, d_pad)),                                         # bo
            ],
            out_specs=pl.BlockSpec((block_b * n_q, d_pad), lambda i: (i, 0)),
        ),
        compiler_params=pltpu.CompilerParams(
            dimension_semantics=("parallel",),
            vmem_limit_bytes=int(vmem_limit),
        ),
    )(x2d, c2d, wq, wk, wv, wo, bo)


def attention_pallas(tokens1, params, tokens2=None, kv_include_self=False,
                     *, heads, dim_head, block_b=None, compute_dtype=None,
                     pad_lanes=True):
    """Reproduces Attention.forward semantics."""
    if tokens2 is None:
        context = tokens1
    else:
        context = tokens2
    if kv_include_self:
        if tokens2 is None:
            raise ValueError("kv_include_self=True requires tokens2 (as in the reference).")
        # Reference module does an elementwise add (tokens2 + tokens1), not concat.
        context = tokens2 + tokens1

    B, n_q, D = tokens1.shape
    n_kv = context.shape[1]
    inner = heads * dim_head
    scale = dim_head ** (-0.5)

    if compute_dtype is None:
        # bf16 MXU operands on f32 inputs (f32 accumulation + f32 softmax kept).
        compute_dtype = jnp.bfloat16 if tokens1.dtype == jnp.float32 else tokens1.dtype
    cd = compute_dtype

    # Lane-dense feature dim: pad D to a multiple of 128 so the output slab is
    # stored with unmasked full-lane vst (padding columns are exact zeros).
    d_pad = (-(-D // 128) * 128) if pad_lanes else D

    wq = _pad_first(params["wq"], d_pad).astype(cd)
    wk = _pad_first(params["wk"], d_pad).astype(cd)
    wv = _pad_first(params["wv"], d_pad).astype(cd)
    wo = _pad_last(params["wo"], d_pad).astype(cd)
    bo = _pad_last(params["bo"], d_pad).astype(jnp.float32)

    x2d = _pad_last(tokens1.reshape(B * n_q, D), d_pad).astype(cd)
    c2d = _pad_last(context.reshape(B * n_kv, D), d_pad).astype(cd)

    cd_bytes = jnp.dtype(cd).itemsize
    out_bytes = jnp.dtype(tokens1.dtype).itemsize
    # Conservative: assume default double buffering for resident weights.
    weights_bytes = 2 * ((3 * d_pad * inner + inner * d_pad) * cd_bytes + d_pad * 4)
    vmem_budget = _vmem_budget_bytes()
    dual_core = _dual_tensorcore()

    if block_b is None:
        block_b = _choose_block_b(B, n_q, n_kv, d_pad, inner, heads, cd_bytes,
                                  out_bytes, weights_bytes, vmem_budget, dual_core)
    if B % block_b:
        raise ValueError(f"block_b={block_b} must divide batch size {B}")
    grid_b = B // block_b

    call = functools.partial(
        _call_pallas, x2d, c2d, wq, wk, wv, wo, bo,
        heads=heads, dim_head=dim_head, block_b=block_b, grid_b=grid_b,
        n_q=n_q, n_kv=n_kv, d_pad=d_pad, scale=scale, compute_dtype=cd,
        out_dtype=tokens1.dtype, vmem_limit=vmem_budget)

    try:
        out2d = call(single_buffer_weights=True)
    except Exception:
        # Buffered(1) single-buffering of resident weights may not be supported
        # on every jax/libtpu version; fall back to default double buffering.
        out2d = call(single_buffer_weights=False)

    if d_pad != D:
        out2d = out2d[:, :D]
    return out2d.reshape(B, n_q, D)


# --------------------------------------------------------------------------- #
# Pure-JAX reference & params                                                 #
# --------------------------------------------------------------------------- #
def attention_reference(tokens1, params, tokens2=None, kv_include_self=False,
                        *, heads, dim_head):
    """Pure-JAX f32 reference of the PyTorch forward (for verification)."""
    if tokens2 is None:
        context = tokens1
    else:
        context = tokens2
    if kv_include_self:
        context = tokens2 + tokens1

    wq, wk, wv, wo, bo = (params[k] for k in ("wq", "wk", "wv", "wo", "bo"))
    scale = dim_head ** (-0.5)
    B, N, D = tokens1.shape
    M = context.shape[1]

    q = tokens1 @ wq
    k = context @ wk
    v = context @ wv

    def split_heads(t, n):
        return t.reshape(B, n, heads, dim_head).transpose(0, 2, 1, 3)

    qh, kh, vh = split_heads(q, N), split_heads(k, M), split_heads(v, M)
    dots = jnp.einsum('bhid,bhjd->bhij', qh, kh) * scale
    attn = jax.nn.softmax(dots, axis=-1)
    out = jnp.einsum('bhij,bhjd->bhid', attn, vh)
    out = out.transpose(0, 2, 1, 3).reshape(B, N, heads * dim_head)
    return out @ wo + bo[0]


def init_params(key, dim, heads, dim_head, dtype=jnp.float32):
    inner = heads * dim_head
    k1, k2, k3, k4, k5 = jax.random.split(key, 5)
    # nn.Linear stores weight as (out, in); we store transposed (in, out).
    # wk/wv correspond to the two halves of the PyTorch fused to_kv weight.
    wq = jax.random.normal(k1, (dim, inner), dtype) * 0.02
    wk = jax.random.normal(k2, (dim, inner), dtype) * 0.02
    wv = jax.random.normal(k3, (dim, inner), dtype) * 0.02
    wo = jax.random.normal(k4, (inner, dim), dtype) * 0.02
    bo = jax.random.normal(k5, (1, dim), dtype) * 0.02
    return {"wq": wq, "wk": wk, "wv": wv, "wo": wo, "bo": bo}


# --------------------------------------------------------------------------- #
# Self-test                                                                   #
# --------------------------------------------------------------------------- #
if __name__ == "__main__":
    # Small shapes consistent with the module: dim=32, heads=4, dim_head=8.
    B, N, dim = 2, 8, 32
    heads, dim_head = 4, 8

    key = jax.random.PRNGKey(0)
    kp, kx, ky = jax.random.split(key, 3)
    params = init_params(kp, dim, heads, dim_head)

    tokens1 = jax.random.normal(kx, (B, N, dim), jnp.float32)
    tokens2 = jax.random.normal(ky, (B, N, dim), jnp.float32)

    ref_self = attention_reference(tokens1, params, heads=heads, dim_head=dim_head)
    ref_cross = attention_reference(tokens1, params, tokens2=tokens2,
                                    kv_include_self=True, heads=heads, dim_head=dim_head)

    # f32-operand path: tight tolerance against the f32 reference.
    out_self = jax.block_until_ready(
        attention_pallas(tokens1, params, heads=heads, dim_head=dim_head,
                         compute_dtype=jnp.float32))
    out_cross = jax.block_until_ready(
        attention_pallas(tokens1, params, tokens2=tokens2, kv_include_self=True,
                         heads=heads, dim_head=dim_head, compute_dtype=jnp.float32))
    assert out_self.shape == (B, N, dim)
    err_self = float(jnp.max(jnp.abs(out_self - ref_self)))
    err_cross = float(jnp.max(jnp.abs(out_cross - ref_cross)))
    assert jnp.allclose(out_self, ref_self, atol=2e-3, rtol=2e-3), err_self
    assert jnp.allclose(out_cross, ref_cross, atol=2e-3, rtol=2e-3), err_cross

    # Default path: bf16 MXU operands (f32 accumulation / softmax) — looser tol.
    out_self_bf16 = jax.block_until_ready(
        attention_pallas(tokens1, params, heads=heads, dim_head=dim_head))
    err_bf16 = float(jnp.max(jnp.abs(out_self_bf16 - ref_self)))
    assert jnp.allclose(out_self_bf16, ref_self, atol=3e-2, rtol=3e-2), err_bf16

    print("KERNEL_OK")
</pallas_src>

<mosaic_0001>
module attributes {stable_mosaic.version = 11 : i64} {
  func.func @_attention_kernel(%arg0: i32, %arg1: memref<16x128xf32, #tpu.memory_space<vmem>>, %arg2: memref<16x128xf32, #tpu.memory_space<vmem>>, %arg3: memref<128x32xf32, #tpu.memory_space<vmem>>, %arg4: memref<128x32xf32, #tpu.memory_space<vmem>>, %arg5: memref<128x32xf32, #tpu.memory_space<vmem>>, %arg6: memref<32x128xf32, #tpu.memory_space<vmem>>, %arg7: memref<1x128xf32, #tpu.memory_space<vmem>>, %arg8: memref<16x128xf32, #tpu.memory_space<vmem>>) attributes {dimension_semantics = [#tpu.dimension_semantics<parallel>], iteration_bounds = array<i64: 1>, scalar_prefetch = 0 : i64, scratch_operands = 0 : i64, tpu.core_type = #tpu.core_type<tc>, window_params = [{transform_indices = @transform_0, window_bounds = array<i64: 16, 128>}, {transform_indices = @transform_1, window_bounds = array<i64: 16, 128>}, {pipeline_mode = #tpu.pipeline_mode<synchronous>, transform_indices = @transform_2, window_bounds = array<i64: 128, 32>}, {pipeline_mode = #tpu.pipeline_mode<synchronous>, transform_indices = @transform_3, window_bounds = array<i64: 128, 32>}, {pipeline_mode = #tpu.pipeline_mode<synchronous>, transform_indices = @transform_4, window_bounds = array<i64: 128, 32>}, {pipeline_mode = #tpu.pipeline_mode<synchronous>, transform_indices = @transform_5, window_bounds = array<i64: 32, 128>}, {pipeline_mode = #tpu.pipeline_mode<synchronous>, transform_indices = @transform_6, window_bounds = array<i64: 1, 128>}, {transform_indices = @transform_7, window_bounds = array<i64: 16, 128>}]} {
    %c0 = arith.constant 0 : index
    %c0_0 = arith.constant 0 : index
    %0 = vector.load %arg1[%c0, %c0_0] : memref<16x128xf32, #tpu.memory_space<vmem>>, vector<16x128xf32>
    %c0_1 = arith.constant 0 : index
    %c0_2 = arith.constant 0 : index
    %1 = vector.load %arg2[%c0_1, %c0_2] : memref<16x128xf32, #tpu.memory_space<vmem>>, vector<16x128xf32>
    %c0_3 = arith.constant 0 : index
    %c0_4 = arith.constant 0 : index
    %2 = vector.load %arg3[%c0_3, %c0_4] : memref<128x32xf32, #tpu.memory_space<vmem>>, vector<128x32xf32>
    %cst = arith.constant dense<0.000000e+00> : vector<16x32xf32>
    %3 = tpu.matmul %0, %2, %cst {dimension_numbers = #tpu.dot_dimension_numbers<[1], [0], [0], [1], [0, 0, 1, 1], [], []>} : vector<16x128xf32>, vector<128x32xf32>, vector<16x32xf32> -> vector<16x32xf32>
    %cst_5 = arith.constant 0.353553385 : f32
    %4 = vector.broadcast %cst_5 : f32 to vector<16x32xf32>
    %5 = arith.mulf %3, %4 : vector<16x32xf32>
    %c0_6 = arith.constant 0 : index
    %c0_7 = arith.constant 0 : index
    %6 = vector.load %arg4[%c0_6, %c0_7] : memref<128x32xf32, #tpu.memory_space<vmem>>, vector<128x32xf32>
    %cst_8 = arith.constant dense<0.000000e+00> : vector<16x32xf32>
    %7 = tpu.matmul %1, %6, %cst_8 {dimension_numbers = #tpu.dot_dimension_numbers<[1], [0], [0], [1], [0, 0, 1, 1], [], []>} : vector<16x128xf32>, vector<128x32xf32>, vector<16x32xf32> -> vector<16x32xf32>
    %c0_9 = arith.constant 0 : index
    %c0_10 = arith.constant 0 : index
    %8 = vector.load %arg5[%c0_9, %c0_10] : memref<128x32xf32, #tpu.memory_space<vmem>>, vector<128x32xf32>
    %cst_11 = arith.constant dense<0.000000e+00> : vector<16x32xf32>
    %9 = tpu.matmul %1, %8, %cst_11 {dimension_numbers = #tpu.dot_dimension_numbers<[1], [0], [0], [1], [0, 0, 1, 1], [], []>} : vector<16x128xf32>, vector<128x32xf32>, vector<16x32xf32> -> vector<16x32xf32>
    %10 = vector.shape_cast %5 : vector<16x32xf32> to vector<2x8x4x8xf32>
    %11 = tpu.transpose %10, [0, 2, 1, 3] : vector<2x8x4x8xf32> -> vector<2x4x8x8xf32>
    %12 = vector.shape_cast %11 : vector<2x4x8x8xf32> to vector<8x8x8xf32>
    %13 = vector.shape_cast %7 : vector<16x32xf32> to vector<2x8x4x8xf32>
    %14 = tpu.transpose %13, [0, 2, 1, 3] : vector<2x8x4x8xf32> -> vector<2x4x8x8xf32>
    %15 = vector.shape_cast %14 : vector<2x4x8x8xf32> to vector<8x8x8xf32>
    %16 = vector.shape_cast %9 : vector<16x32xf32> to vector<2x8x4x8xf32>
    %17 = tpu.transpose %16, [0, 2, 1, 3] : vector<2x8x4x8xf32> -> vector<2x4x8x8xf32>
    %18 = vector.shape_cast %17 : vector<2x4x8x8xf32> to vector<8x8x8xf32>
    "tpu.trace_start"() <{level = 10 : i32, message = "bnd,bmd->bnm"}> : () -> ()
    %cst_12 = arith.constant dense<0.000000e+00> : vector<8x8x8xf32>
    %19 = tpu.matmul %12, %15, %cst_12 {dimension_numbers = #tpu.dot_dimension_numbers<[2], [2], [1], [1], [0, 0, 0, 1, 1, 1], [0], [0]>} : vector<8x8x8xf32>, vector<8x8x8xf32>, vector<8x8x8xf32> -> vector<8x8x8xf32>
    "tpu.trace_stop"() : () -> ()
    %cst_13 = arith.constant dense<0xFF800000> : vector<8x8xf32>
    %20 = vector.multi_reduction <maximumf>, %19, %cst_13 [2] : vector<8x8x8xf32> to vector<8x8xf32>
    %21 = vector.shape_cast %20 : vector<8x8xf32> to vector<8x8x1xf32>
    %22 = vector.broadcast %21 : vector<8x8x1xf32> to vector<8x8x8xf32>
    %23 = arith.subf %19, %22 : vector<8x8x8xf32>
    %24 = math.exp %23 : vector<8x8x8xf32>
    %cst_14 = arith.constant dense<0.000000e+00> : vector<8x8xf32>
    %25 = vector.multi_reduction <add>, %24, %cst_14 [2] : vector<8x8x8xf32> to vector<8x8xf32>
    %26 = vector.shape_cast %25 : vector<8x8xf32> to vector<8x8x1xf32>
    %27 = tpu.reciprocal %26 {approx = true} : vector<8x8x1xf32> -> vector<8x8x1xf32>
    %28 = vector.broadcast %27 : vector<8x8x1xf32> to vector<8x8x8xf32>
    %29 = arith.mulf %24, %28 : vector<8x8x8xf32>
    "tpu.trace_start"() <{level = 10 : i32, message = "bnm,bmd->bnd"}> : () -> ()
    %cst_15 = arith.constant dense<0.000000e+00> : vector<8x8x8xf32>
    %30 = tpu.matmul %29, %18, %cst_15 {dimension_numbers = #tpu.dot_dimension_numbers<[2], [1], [1], [2], [0, 0, 0, 1, 1, 2], [0], [0]>} : vector<8x8x8xf32>, vector<8x8x8xf32>, vector<8x8x8xf32> -> vector<8x8x8xf32>
    "tpu.trace_stop"() : () -> ()
    %31 = vector.shape_cast %30 : vector<8x8x8xf32> to vector<2x4x8x8xf32>
    %32 = tpu.transpose %31, [0, 2, 1, 3] : vector<2x4x8x8xf32> -> vector<2x8x4x8xf32>
    %33 = vector.shape_cast %32 : vector<2x8x4x8xf32> to vector<16x32xf32>
    %c0_16 = arith.constant 0 : index
    %c0_17 = arith.constant 0 : index
    %34 = vector.load %arg6[%c0_16, %c0_17] : memref<32x128xf32, #tpu.memory_space<vmem>>, vector<32x128xf32>
    %cst_18 = arith.constant dense<0.000000e+00> : vector<16x128xf32>
    %35 = tpu.matmul %33, %34, %cst_18 {dimension_numbers = #tpu.dot_dimension_numbers<[1], [0], [0], [1], [0, 0, 1, 1], [], []>} : vector<16x32xf32>, vector<32x128xf32>, vector<16x128xf32> -> vector<16x128xf32>
    %c0_19 = arith.constant 0 : index
    %c0_20 = arith.constant 0 : index
    %36 = vector.load %arg7[%c0_19, %c0_20] : memref<1x128xf32, #tpu.memory_space<vmem>>, vector<1x128xf32>
    %37 = vector.broadcast %36 : vector<1x128xf32> to vector<16x128xf32>
    %38 = arith.addf %35, %37 : vector<16x128xf32>
    %c0_21 = arith.constant 0 : index
    %c0_22 = arith.constant 0 : index
    %39 = vector.load %arg8[%c0_21, %c0_22] : memref<16x128xf32, #tpu.memory_space<vmem>>, vector<16x128xf32>
    tpu.vector_store %arg8[%c0_21, %c0_22], %38 {strides = array<i32>} : memref<16x128xf32, #tpu.memory_space<vmem>>, vector<16x128xf32>,
    return
  }
  func.func @transform_0(%arg0: i32) -> (i32, i32) {
    %c0_i32 = arith.constant 0 : i32
    %c0_i32_0 = arith.constant 0 : i32
    return %arg0, %c0_i32 : i32, i32
  }
  func.func @transform_1(%arg0: i32) -> (i32, i32) {
    %c0_i32 = arith.constant 0 : i32
    %c0_i32_0 = arith.constant 0 : i32
    return %arg0, %c0_i32 : i32, i32
  }
  func.func @transform_2(%arg0: i32) -> (i32, i32) {
    %c0_i32 = arith.constant 0 : i32
    %c0_i32_0 = arith.constant 0 : i32
    %c0_i32_1 = arith.constant 0 : i32
    return %c0_i32, %c0_i32_0 : i32, i32
  }
  func.func @transform_3(%arg0: i32) -> (i32, i32) {
    %c0_i32 = arith.constant 0 : i32
    %c0_i32_0 = arith.constant 0 : i32
    %c0_i32_1 = arith.constant 0 : i32
    return %c0_i32, %c0_i32_0 : i32, i32
  }
  func.func @transform_4(%arg0: i32) -> (i32, i32) {
    %c0_i32 = arith.constant 0 : i32
    %c0_i32_0 = arith.constant 0 : i32
    %c0_i32_1 = arith.constant 0 : i32
    return %c0_i32, %c0_i32_0 : i32, i32
  }
  func.func @transform_5(%arg0: i32) -> (i32, i32) {
    %c0_i32 = arith.constant 0 : i32
    %c0_i32_0 = arith.constant 0 : i32
    %c0_i32_1 = arith.constant 0 : i32
    return %c0_i32, %c0_i32_0 : i32, i32
  }
  func.func @transform_6(%arg0: i32) -> (i32, i32) {
    %c0_i32 = arith.constant 0 : i32
    %c0_i32_0 = arith.constant 0 : i32
    %c0_i32_1 = arith.constant 0 : i32
    return %c0_i32, %c0_i32_0 : i32, i32
  }
  func.func @transform_7(%arg0: i32) -> (i32, i32) {
    %c0_i32 = arith.constant 0 : i32
    %c0_i32_0 = arith.constant 0 : i32
    return %arg0, %c0_i32 : i32, i32
  }
}

module attributes {stable_mosaic.version = 11 : i64} {
  func.func @_attention_kernel(%arg0: i32, %arg1: memref<16x128xf32, #tpu.memory_space<vmem>>, %arg2: memref<16x128xf32, #tpu.memory_space<vmem>>, %arg3: memref<128x32xf32, #tpu.memory_space<vmem>>, %arg4: memref<128x32xf32, #tpu.memory_space<vmem>>, %arg5: memref<128x32xf32, #tpu.memory_space<vmem>>, %arg6: memref<32x128xf32, #tpu.memory_space<vmem>>, %arg7: memref<1x128xf32, #tpu.memory_space<vmem>>, %arg8: memref<16x128xf32, #tpu.memory_space<vmem>>) attributes {dimension_semantics = [#tpu.dimension_semantics<parallel>], iteration_bounds = array<i64: 1>, scalar_prefetch = 0 : i64, scratch_operands = 0 : i64, tpu.core_type = #tpu.core_type<tc>, window_params = [{transform_indices = @transform_0, window_bounds = array<i64: 16, 128>}, {transform_indices = @transform_1, window_bounds = array<i64: 16, 128>}, {pipeline_mode = #tpu.pipeline_mode<synchronous>, transform_indices = @transform_2, window_bounds = array<i64: 128, 32>}, {pipeline_mode = #tpu.pipeline_mode<synchronous>, transform_indices = @transform_3, window_bounds = array<i64: 128, 32>}, {pipeline_mode = #tpu.pipeline_mode<synchronous>, transform_indices = @transform_4, window_bounds = array<i64: 128, 32>}, {pipeline_mode = #tpu.pipeline_mode<synchronous>, transform_indices = @transform_5, window_bounds = array<i64: 32, 128>}, {pipeline_mode = #tpu.pipeline_mode<synchronous>, transform_indices = @transform_6, window_bounds = array<i64: 1, 128>}, {transform_indices = @transform_7, window_bounds = array<i64: 16, 128>}]} {
    %c0 = arith.constant 0 : index
    %c0_0 = arith.constant 0 : index
    %0 = vector.load %arg1[%c0, %c0_0] : memref<16x128xf32, #tpu.memory_space<vmem>>, vector<16x128xf32>
    %c0_1 = arith.constant 0 : index
    %c0_2 = arith.constant 0 : index
    %1 = vector.load %arg2[%c0_1, %c0_2] : memref<16x128xf32, #tpu.memory_space<vmem>>, vector<16x128xf32>
    %c0_3 = arith.constant 0 : index
    %c0_4 = arith.constant 0 : index
    %2 = vector.load %arg3[%c0_3, %c0_4] : memref<128x32xf32, #tpu.memory_space<vmem>>, vector<128x32xf32>
    %cst = arith.constant dense<0.000000e+00> : vector<16x32xf32>
    %3 = tpu.matmul %0, %2, %cst {dimension_numbers = #tpu.dot_dimension_numbers<[1], [0], [0], [1], [0, 0, 1, 1], [], []>} : vector<16x128xf32>, vector<128x32xf32>, vector<16x32xf32> -> vector<16x32xf32>
    %cst_5 = arith.constant 0.353553385 : f32
    %4 = vector.broadcast %cst_5 : f32 to vector<16x32xf32>
    %5 = arith.mulf %3, %4 : vector<16x32xf32>
    %c0_6 = arith.constant 0 : index
    %c0_7 = arith.constant 0 : index
    %6 = vector.load %arg4[%c0_6, %c0_7] : memref<128x32xf32, #tpu.memory_space<vmem>>, vector<128x32xf32>
    %cst_8 = arith.constant dense<0.000000e+00> : vector<16x32xf32>
    %7 = tpu.matmul %1, %6, %cst_8 {dimension_numbers = #tpu.dot_dimension_numbers<[1], [0], [0], [1], [0, 0, 1, 1], [], []>} : vector<16x128xf32>, vector<128x32xf32>, vector<16x32xf32> -> vector<16x32xf32>
    %c0_9 = arith.constant 0 : index
    %c0_10 = arith.constant 0 : index
    %8 = vector.load %arg5[%c0_9, %c0_10] : memref<128x32xf32, #tpu.memory_space<vmem>>, vector<128x32xf32>
    %cst_11 = arith.constant dense<0.000000e+00> : vector<16x32xf32>
    %9 = tpu.matmul %1, %8, %cst_11 {dimension_numbers = #tpu.dot_dimension_numbers<[1], [0], [0], [1], [0, 0, 1, 1], [], []>} : vector<16x128xf32>, vector<128x32xf32>, vector<16x32xf32> -> vector<16x32xf32>
    %10 = vector.shape_cast %5 : vector<16x32xf32> to vector<2x8x4x8xf32>
    %11 = tpu.transpose %10, [0, 2, 1, 3] : vector<2x8x4x8xf32> -> vector<2x4x8x8xf32>
    %12 = vector.shape_cast %11 : vector<2x4x8x8xf32> to vector<8x8x8xf32>
    %13 = vector.shape_cast %7 : vector<16x32xf32> to vector<2x8x4x8xf32>
    %14 = tpu.transpose %13, [0, 2, 1, 3] : vector<2x8x4x8xf32> -> vector<2x4x8x8xf32>
    %15 = vector.shape_cast %14 : vector<2x4x8x8xf32> to vector<8x8x8xf32>
    %16 = vector.shape_cast %9 : vector<16x32xf32> to vector<2x8x4x8xf32>
    %17 = tpu.transpose %16, [0, 2, 1, 3] : vector<2x8x4x8xf32> -> vector<2x4x8x8xf32>
    %18 = vector.shape_cast %17 : vector<2x4x8x8xf32> to vector<8x8x8xf32>
    "tpu.trace_start"() <{level = 10 : i32, message = "bnd,bmd->bnm"}> : () -> ()
    %cst_12 = arith.constant dense<0.000000e+00> : vector<8x8x8xf32>
    %19 = tpu.matmul %12, %15, %cst_12 {dimension_numbers = #tpu.dot_dimension_numbers<[2], [2], [1], [1], [0, 0, 0, 1, 1, 1], [0], [0]>} : vector<8x8x8xf32>, vector<8x8x8xf32>, vector<8x8x8xf32> -> vector<8x8x8xf32>
    "tpu.trace_stop"() : () -> ()
    %cst_13 = arith.constant dense<0xFF800000> : vector<8x8xf32>
    %20 = vector.multi_reduction <maximumf>, %19, %cst_13 [2] : vector<8x8x8xf32> to vector<8x8xf32>
    %21 = vector.shape_cast %20 : vector<8x8xf32> to vector<8x8x1xf32>
    %22 = vector.broadcast %21 : vector<8x8x1xf32> to vector<8x8x8xf32>
    %23 = arith.subf %19, %22 : vector<8x8x8xf32>
    %24 = math.exp %23 : vector<8x8x8xf32>
    %cst_14 = arith.constant dense<0.000000e+00> : vector<8x8xf32>
    %25 = vector.multi_reduction <add>, %24, %cst_14 [2] : vector<8x8x8xf32> to vector<8x8xf32>
    %26 = vector.shape_cast %25 : vector<8x8xf32> to vector<8x8x1xf32>
    %27 = tpu.reciprocal %26 {approx = true} : vector<8x8x1xf32> -> vector<8x8x1xf32>
    %28 = vector.broadcast %27 : vector<8x8x1xf32> to vector<8x8x8xf32>
    %29 = arith.mulf %24, %28 : vector<8x8x8xf32>
    "tpu.trace_start"() <{level = 10 : i32, message = "bnm,bmd->bnd"}> : () -> ()
    %cst_15 = arith.constant dense<0.000000e+00> : vector<8x8x8xf32>
    %30 = tpu.matmul %29, %18, %cst_15 {dimension_numbers = #tpu.dot_dimension_numbers<[2], [1], [1], [2], [0, 0, 0, 1, 1, 2], [0], [0]>} : vector<8x8x8xf32>, vector<8x8x8xf32>, vector<8x8x8xf32> -> vector<8x8x8xf32>
    "tpu.trace_stop"() : () -> ()
    %31 = vector.shape_cast %30 : vector<8x8x8xf32> to vector<2x4x8x8xf32>
    %32 = tpu.transpose %31, [0, 2, 1, 3] : vector<2x4x8x8xf32> -> vector<2x8x4x8xf32>
    %33 = vector.shape_cast %32 : vector<2x8x4x8xf32> to vector<16x32xf32>
    %c0_16 = arith.constant 0 : index
    %c0_17 = arith.constant 0 : index
    %34 = vector.load %arg6[%c0_16, %c0_17] : memref<32x128xf32, #tpu.memory_space<vmem>>, vector<32x128xf32>
    %cst_18 = arith.constant dense<0.000000e+00> : vector<16x128xf32>
    %35 = tpu.matmul %33, %34, %cst_18 {dimension_numbers = #tpu.dot_dimension_numbers<[1], [0], [0], [1], [0, 0, 1, 1], [], []>} : vector<16x32xf32>, vector<32x128xf32>, vector<16x128xf32> -> vector<16x128xf32>
    %c0_19 = arith.constant 0 : index
    %c0_20 = arith.constant 0 : index
    %36 = vector.load %arg7[%c0_19, %c0_20] : memref<1x128xf32, #tpu.memory_space<vmem>>, vector<1x128xf32>
    %37 = vector.broadcast %36 : vector<1x128xf32> to vector<16x128xf32>
    %38 = arith.addf %35, %37 : vector<16x128xf32>
    %c0_21 = arith.constant 0 : index
    %c0_22 = arith.constant 0 : index
    %39 = vector.load %arg8[%c0_21, %c0_22] : memref<16x128xf32, #tpu.memory_space<vmem>>, vector<16x128xf32>
    tpu.vector_store %arg8[%c0_21, %c0_22], %38 {strides = array<i32>} : memref<16x128xf32, #tpu.memory_space<vmem>>, vector<16x128xf32>,
    return
  }
  func.func @transform_0(%arg0: i32) -> (i32, i32) {
    %c0_i32 = arith.constant 0 : i32
    %c0_i32_0 = arith.constant 0 : i32
    return %arg0, %c0_i32 : i32, i32
  }
  func.func @transform_1(%arg0: i32) -> (i32, i32) {
    %c0_i32 = arith.constant 0 : i32
    %c0_i32_0 = arith.constant 0 : i32
    return %arg0, %c0_i32 : i32, i32
  }
  func.func @transform_2(%arg0: i32) -> (i32, i32) {
    %c0_i32 = arith.constant 0 : i32
    %c0_i32_0 = arith.constant 0 : i32
    %c0_i32_1 = arith.constant 0 : i32
    return %c0_i32, %c0_i32_0 : i32, i32
  }
  func.func @transform_3(%arg0: i32) -> (i32, i32) {
    %c0_i32 = arith.constant 0 : i32
    %c0_i32_0 = arith.constant 0 : i32
    %c0_i32_1 = arith.constant 0 : i32
    return %c0_i32, %c0_i32_0 : i32, i32
  }
  func.func @transform_4(%arg0: i32) -> (i32, i32) {
    %c0_i32 = arith.constant 0 : i32
    %c0_i32_0 = arith.constant 0 : i32
    %c0_i32_1 = arith.constant 0 : i32
    return %c0_i32, %c0_i32_0 : i32, i32
  }
  func.func @transform_5(%arg0: i32) -> (i32, i32) {
    %c0_i32 = arith.constant 0 : i32
    %c0_i32_0 = arith.constant 0 : i32
    %c0_i32_1 = arith.constant 0 : i32
    return %c0_i32, %c0_i32_0 : i32, i32
  }
  func.func @transform_6(%arg0: i32) -> (i32, i32) {
    %c0_i32 = arith.constant 0 : i32
    %c0_i32_0 = arith.constant 0 : i32
    %c0_i32_1 = arith.constant 0 : i32
    return %c0_i32, %c0_i32_0 : i32, i32
  }
  func.func @transform_7(%arg0: i32) -> (i32, i32) {
    %c0_i32 = arith.constant 0 : i32
    %c0_i32_0 = arith.constant 0 : i32
    return %arg0, %c0_i32 : i32, i32
  }
}

</mosaic_0001>

<bundles_post_ra>
// kernel: tpu_custom_call.1
= control target key start
LH: loop header
LB: loop body
LE: loop exit
PB: predicated region body
PF: predicated region fallthrough
CT: control target
= control target key end

     0   :  { %s2559_s0 = inlined_call_operand.vmem [shape: f32[16,128], index: 0, kind: input, shape index: {}]   ;;  %s2560_s1 = inlined_call_operand.vmem [shape: f32[16,128], index: 1, kind: input, shape index: {}]   ;;  %s2561_s2 = inlined_call_operand.vmem [shape: f32[128,32], index: 2, kind: input, shape index: {}]   ;;  %s2562_s3 = inlined_call_operand.vmem [shape: f32[128,32], index: 3, kind: input, shape index: {}]   ;;  %s2563_s4 = inlined_call_operand.vmem [shape: f32[128,32], index: 4, kind: input, shape index: {}]   ;;  %s2564_s5 = inlined_call_operand.vmem [shape: f32[32,128], index: 5, kind: input, shape index: {}]   ;;  %s2565_s6 = inlined_call_operand.vmem [shape: f32[1,128], index: 6, kind: input, shape index: {}]   ;;  %s2566_s7 = inlined_call_operand.hbm [shape: f32[16,128], index: 7, kind: output, shape index: {}]  }
   0x1   :  { %v46_v0 = vld [vmem:[%s2561_s2 + $0x78] sm:$0xff]  ;;  %v45_v2 = vld [vmem:[%s2561_s2 + $0x70] sm:$0xff]  ;;  %v44_v4 = vld [vmem:[%s2561_s2 + $0x68] sm:$0xff] }
   0x2   :  { %v87_v1 = vld [vmem:[%s2562_s3 + $0x78] sm:$0xff]  ;;  %47 = vmatpush.msra.mxu0 %v46_v0  ;;  %v86_v3 = vld [vmem:[%s2562_s3 + $0x70] sm:$0xff]  ;;  %v85_v5 = vld [vmem:[%s2562_s3 + $0x68] sm:$0xff] }
   0x3   :  { %88 = vmatpush.msra.mxu1 %v87_v1  ;;  %v43_v6 = vld [vmem:[%s2561_s2 + $0x60] sm:$0xff]  ;;  %v42_v8 = vld [vmem:[%s2561_s2 + $0x58] sm:$0xff]  ;;  %v41_v10 = vld [vmem:[%s2561_s2 + $0x50] sm:$0xff] }
   0x4   :  { %48 = vmatpush.msra.mxu0 %v45_v2  ;;  %v84_v7 = vld [vmem:[%s2562_s3 + $0x60] sm:$0xff]  ;;  %v83_v9 = vld [vmem:[%s2562_s3 + $0x58] sm:$0xff]  ;;  %v82_v11 = vld [vmem:[%s2562_s3 + $0x50] sm:$0xff] }
   0x5   :  { %89 = vmatpush.msra.mxu1 %v86_v3  ;;  %v40_v12 = vld [vmem:[%s2561_s2 + $0x48] sm:$0xff]  ;;  %v39_v14 = vld [vmem:[%s2561_s2 + $0x40] sm:$0xff] }
   0x6   :  { %49 = vmatpush.msra.mxu0 %v44_v4  ;;  %v81_v13 = vld [vmem:[%s2562_s3 + $0x48] sm:$0xff]  ;;  %v80_v15 = vld [vmem:[%s2562_s3 + $0x40] sm:$0xff] }
   0x7   :  { %90 = vmatpush.msra.mxu1 %v85_v5 }
   0x8   :  { %50 = vmatpush.msra.mxu0 %v43_v6 }
   0x9   :  { %91 = vmatpush.msra.mxu1 %v84_v7 }
   0xa   :  { %51 = vmatpush.msra.mxu0 %v42_v8 }
   0xb   :  { %92 = vmatpush.msra.mxu1 %v83_v9 }
   0xc   :  { %52 = vmatpush.msra.mxu0 %v41_v10 }
   0xd   :  { %93 = vmatpush.msra.mxu1 %v82_v11 }
   0xe   :  { %12 = vsyncpa [#allocation3], 0  ;;  %53 = vmatpush.msra.mxu0 %v40_v12  ;;  %v38_v16 = vld [vmem:[%s2561_s2 + $0x38] sm:$0xff]  ;;  %v37_v18 = vld [vmem:[%s2561_s2 + $0x30] sm:$0xff]  ;;  %s1772_s25 = smov 104   ;;  %s1773_s26 = smov 120  }
   0xf   :  { %94 = vmatpush.msra.mxu1 %v81_v13  ;;  %v79_v17 = vld [vmem:[%s2562_s3 + $0x38] sm:$0xff]  ;;  %v78_v19 = vld [vmem:[%s2562_s3 + $0x30] sm:$0xff]  ;;  %v36_v20 = vld [vmem:[%s2561_s2 + $0x28] sm:$0xff]  ;;  %s1774_s27 = smov 112   ;;  %v1775_v44 = vmov 1983009808  }
  0x10   :  { %54 = vmatpush.msra.mxu0 %v39_v14  ;;  %v77_v21 = vld [vmem:[%s2562_s3 + $0x28] sm:$0xff]  ;;  %v35_v22 = vld [vmem:[%s2561_s2 + $0x20] sm:$0xff]  ;;  %v34_v24 = vld [vmem:[%s2561_s2 + $0x18] sm:$0xff]  ;;  %v176_v45 = vunpack.c.l.s4 %v1775_v44  ;;  %vm171_vm0 = vcmask 1047556   ;;  %v1776_v56 = vmov 1934713408  }
  0x11   :  { %95 = vmatpush.msra.mxu1 %v80_v15  ;;  %v76_v23 = vld [vmem:[%s2562_s3 + $0x20] sm:$0xff]  ;;  %v75_v25 = vld [vmem:[%s2562_s3 + $0x18] sm:$0xff]  ;;  %v33_v26 = vld [vmem:[%s2561_s2 + $0x10] sm:$0xff]  ;;  %v200_v57 = vunpack.c.l.s4 %v1776_v56  ;;  %vm871_vm1 = vcmask 64512   ;;  %vm1598_vm2 = vcmask 130048   ;;  %vm1601_vm3 = vcmask 195584  }
  0x12   :  { %55 = vmatpush.msra.mxu0 %v38_v16  ;;  %v74_v27 = vld [vmem:[%s2562_s3 + $0x10] sm:$0xff]  ;;  %v32_v28 = vld [vmem:[%s2561_s2 + $0x8] sm:$0xff]  ;;  %v31_v30 = vld [vmem:[%s2561_s2] sm:$0xff]  ;;  %v1959_v53 = vunpack.c.0.s8 %v176_v45  ;;  %vm1612_vm4 = vcmask 261120   ;;  %s1650_s21 = sshll.u32 %s2566_s7, 4  ;;  %s1780_s22 = smov [#allocation2]   ;;  %s1651_s21 = int_to_ptr.hbm [resolvable:$true] %s1650_s21 }
  0x13   :  { %96 = vmatpush.msra.mxu1 %v79_v17  ;;  %v73_v29 = vld [vmem:[%s2562_s3 + $0x8] sm:$0xff]  ;;  %v72_v31 = vld [vmem:[%s2562_s3] sm:$0xff]  ;;  %v1970_v2 = vunpack.c.0.s8 %v200_v57  ;;  %s1648_s2 = sshll.u32 %s1780_s22, 4  ;;  %s1781_s23 = smov 128   ;;  %s1649_s2 = int_to_ptr.vmem [resolvable:$true] %s1648_s2 }
  0x14   :  { %56 = vmatpush.msra.mxu0 %v37_v18  ;;  %v27_v32 = vld [vmem:[%s2559_s0] sm:$0xff]  ;;  %v1930_v34 = vld [vmem:[%s2560_s1 + $0x8] sm:$0xff] }
  0x15   :  { %97 = vmatpush.msra.mxu1 %v78_v19  ;;  %v1924_v33 = vld [vmem:[%s2560_s1] sm:$0xff]  ;;  %v28_v35 = vld [vmem:[%s2559_s0 + $0x8] sm:$0xff] }
  0x16   :  { %57 = vmatpush.msra.mxu0 %v36_v20 }
  0x17   :  { %98 = vmatpush.msra.mxu1 %v77_v21 }
  0x18   :  { %58 = vmatpush.msra.mxu0 %v35_v22 }
  0x19   :  { %99 = vmatpush.msra.mxu1 %v76_v23 }
  0x1a   :  { %59 = vmatpush.msra.mxu0 %v34_v24 }
  0x1b   :  { %100 = vmatpush.msra.mxu1 %v75_v25 }
  0x1c   :  { %60 = vmatpush.msra.mxu0 %v33_v26 }
  0x1d   :  { %101 = vmatpush.msra.mxu1 %v74_v27 }
  0x1e   :  { %61 = vmatpush.msra.mxu0 %v32_v28 }
  0x1f   :  { %102 = vmatpush.msra.mxu1 %v73_v29 }
  0x20   :  { %62 = vmatpush.msra.mxu0 %v31_v30 }
  0x21   :  { %103 = vmatpush.msra.mxu1 %v72_v31  ;;  %63 = vmatmul.f32.vlgmr.msra.gmra.mxu0 %v27_v32 }
  0x22   :  { %104 = vmatmul.f32.vlgmr.msra.gmra.mxu1 %v1924_v33 }
  0x29   :  { %66 = vmatmul.f32.gmra.mxu0 %v28_v35 }
  0x2a   :  { %107 = vmatmul.f32.gmra.mxu1 %v1930_v34 }
  0x9e   :  { %v64_v36 = vpop.f32.mrf.mxu0 }
  0x9f   :  { %v105_v37 = vpop.f32.mrf.mxu1  ;;  %v70_v38 = vmul.f32 0.35355338, %v64_v36 }
  0xa0   :  { %405 = vrot.lane.b32.xlu1 %v105_v37, %s1772_s25  ;;  %393 = vrot.lane.b32.xlu0 %v105_v37, %s1773_s26  ;;  %v413_v0 = vrot.slane %v105_v37, 4 }
  0xa1   :  { %158 = vrot.lane.b32.xlu2 %v70_v38, %s1774_s27  ;;  %v173_v51 = vrot.slane %v70_v38, 4 }
  0xa6   :  { %v67_v40 = vpop.f32.mrf.mxu0 }
  0xa7   :  { %v1942_v39 = vpop.f32.mrf.mxu1  ;;  %v1950_v41 = vmul.f32 0.35355338, %v67_v40 }
  0xa8   :  { %399 = vrot.lane.b32.xlu0 %v105_v37, %s1774_s27  ;;  %152 = vrot.lane.b32.xlu1 %v70_v38, %s1773_s26 }
  0xa9   :  { %164 = vrot.lane.b32.xlu2 %v70_v38, %s1772_s25  ;;  %v229_v57 = vrot.slane %v1950_v41, 4 }
  0xb0   :  { %395 = vrot.lane.b32.xlu0 %v1942_v39, %s1773_s26  ;;  %401 = vrot.lane.b32.xlu1 %v1942_v39, %s1774_s27 }
  0xb1   :  { %407 = vrot.lane.b32.xlu2 %v1942_v39, %s1772_s25 }
  0xb8   :  { %160 = vrot.lane.b32.xlu1 %v1950_v41, %s1774_s27  ;;  %154 = vrot.lane.b32.xlu0 %v1950_v41, %s1773_s26 }
  0xb9   :  { %166 = vrot.lane.b32.xlu2 %v1950_v41, %s1772_s25 }
  0xfb   :  { %v159_v42 = vpop.permute.xlu2 %158 }
  0xfc   :  { %v170_v46 = vrot.slane %v159_v42, 4  ;;  %v174_v58 = vsel %vm171_vm0, %v159_v42, %v173_v51 }
  0xfd   :  { %v182_v1 = vperm.slane %v174_v58, %v1959_v53 }
  0xfe   :  { %v172_v54 = vsel %vm171_vm0, %v170_v46, %v70_v38 }
  0xff   :  { %v178_v60 = vperm.slane %v172_v54, %v1959_v53  ;;  %v209_v20 = vrot.slane %v182_v1, 4 }
 0x101   :  { %v197_v12 = vrot.slane %v178_v60, 4 }
 0x103   :  { %v165_v43 = vpop.permute.xlu2 %164 }
 0x104   :  { %v183_v61 = vrot.slane %v165_v43, 4 }
 0x10b   :  { %v1967_v63 = vpop.permute.xlu2 %407 }
 0x10c   :  { %v479_v45 = vrot.slane %v1967_v63, 4 }
 0x112   :  { %v406_v47 = vpop.permute.xlu1 %405  ;;  %v394_v48 = vpop.permute.xlu0 %393 }
 0x113   :  { %v423_v49 = vrot.slane %v406_v47, 4  ;;  %v425_v50 = vrot.slane %v394_v48, 4  ;;  %v167_v44 = vpop.permute.xlu2 %166 }
 0x114   :  { %v239_v56 = vrot.slane %v167_v44, 4 }
 0x115   :  { %v426_v52 = vsel %vm171_vm0, %v406_v47, %v425_v50  ;;  %v424_v55 = vsel %vm171_vm0, %v423_v49, %v394_v48 }
 0x116   :  { %v434_v59 = vperm.slane %v426_v52, %v1959_v53  ;;  %v430_v62 = vperm.slane %v424_v55, %v1959_v53  ;;  %v469_v55 = vrot.slane %v1942_v39, 4 }
 0x118   :  { %v447_v9 = vrot.slane %v434_v59, 4  ;;  %v435_v13 = vrot.slane %v430_v62, 4 }
 0x11a   :  { %v400_v3 = vpop.permute.xlu0 %399  ;;  %v153_v4 = vpop.permute.xlu1 %152 }
 0x11b   :  { %v411_v5 = vrot.slane %v400_v3, 4  ;;  %v414_v6 = vsel %vm171_vm0, %v400_v3, %v413_v0  ;;  %v184_v7 = vsel %vm171_vm0, %v183_v61, %v153_v4  ;;  %v185_v8 = vrot.slane %v153_v4, 4 }
 0x11c   :  { %v422_v10 = vperm.slane %v414_v6, %v1959_v53  ;;  %v190_v11 = vperm.slane %v184_v7, %v1959_v53 }
 0x11d   :  { %v412_v14 = vsel %vm171_vm0, %v411_v5, %v105_v37  ;;  %v186_v15 = vsel %vm171_vm0, %v165_v43, %v185_v8 }
 0x11e   :  { %v418_v16 = vperm.slane %v412_v14, %v1959_v53  ;;  %v448_v17 = vsel %vm171_vm0, %v447_v9, %v422_v10  ;;  %v449_v18 = vrot.slane %v422_v10, 4  ;;  %v194_v19 = vperm.slane %v186_v15, %v1959_v53 }
 0x11f   :  { %v454_v21 = vperm.slane %v448_v17, %v1970_v2  ;;  %v195_v22 = vrot.slane %v190_v11, 4  ;;  %v198_v23 = vsel %vm171_vm0, %v190_v11, %v197_v12 }
 0x120   :  { %v436_v24 = vsel %vm171_vm0, %v435_v13, %v418_v16  ;;  %v437_v25 = vrot.slane %v418_v16, 4  ;;  %v450_v26 = vsel %vm171_vm0, %v434_v59, %v449_v18  ;;  %v206_v27 = vperm.slane %v198_v23, %v1970_v2 }
 0x121   :  { %v1987_v28 = vperm.slane %v436_v24, %v1970_v2  ;;  %v458_v29 = vperm.slane %v450_v26, %v1970_v2  ;;  %v196_v30 = vsel %vm171_vm0, %v195_v22, %v178_v60  ;;  %v207_v35 = vrot.slane %v194_v19, 4 }
 0x122   :  { %v438_v31 = vsel %vm171_vm0, %v430_v62, %v437_v25  ;;  %v1993_v32 = vperm.slane %v196_v30, %v1970_v2  ;;  %v210_v36 = vsel %vm171_vm0, %v194_v19, %v209_v20  ;;  %v396_v37 = vpop.permute.xlu0 %395  ;;  %v402_v38 = vpop.permute.xlu1 %401  ;;  %v463_v42 = vrot.slane %v454_v21, 4 }
 0x123   :  { %v446_v40 = vperm.slane %v438_v31, %v1970_v2  ;;  %v465_v43 = vrot.slane %v458_v29, 4  ;;  %v208_v46 = vsel %vm171_vm0, %v207_v35, %v182_v1  ;;  %v2000_v48 = vrot.slane %v206_v27, 4 }
 0x124   :  { %v219_v47 = vrot.slane %v1993_v32, 4  ;;  %v2004_v51 = vperm.slane %v208_v46, %v1970_v2  ;;  %v218_v52 = vperm.slane %v210_v36, %v1970_v2  ;;  %v459_v54 = vrot.slane %v1987_v28, 4 }
 0x125   :  { %v461_v49 = vrot.slane %v446_v40, 4  ;;  %v466_v50 = vsel %vm171_vm0, 0.0, %v465_v43  ;;  %v464_v59 = vsel %vm171_vm0, 0.0, %v463_v42  ;;  %v2014_v60 = vsel %vm171_vm0, 0.0, %v2000_v48 }
 0x126   :  { %v480_v61 = vsel %vm171_vm0, %v479_v45, %v396_v37  ;;  %v2018_v62 = vsel %vm171_vm0, %v465_v43, %v454_v21  ;;  %v539_v0 = vrot.slane %v466_v50, 4  ;;  %v2021_v1 = vsel %vm171_vm0, 0.0, %v219_v47 }
 0x127   :  { %v462_v58 = vsel %vm171_vm0, 0.0, %v461_v49  ;;  %v481_v3 = vrot.slane %v396_v37, 4  ;;  %v223_v4 = vrot.slane %v2004_v51, 4  ;;  %v2024_v5 = vrot.slane %v218_v52, 4 }
 0x128   :  { %v486_v6 = vperm.slane %v480_v61, %v1959_v53  ;;  %v467_v7 = vrot.slane %v402_v38, 4  ;;  %v528_v8 = vrot.slane %v462_v58, 4  ;;  %v288_v9 = vrot.slane %v2014_v60, 4 }
 0x129   :  { %v482_v10 = vsel %vm171_vm0, %v1967_v63, %v481_v3  ;;  %v470_v11 = vsel %vm171_vm0, %v402_v38, %v469_v55  ;;  %v460_v27 = vsel %vm171_vm0, 0.0, %v459_v54  ;;  %v523_v35 = vsel %vm171_vm0, %v461_v49, %v1987_v28 }
 0x12a   :  { %v161_v12 = vpop.permute.xlu1 %160  ;;  %v155_v13 = vpop.permute.xlu0 %154  ;;  %v490_v14 = vperm.slane %v482_v10, %v1959_v53  ;;  %v491_v15 = vrot.slane %v486_v6, 4  ;;  %v468_v16 = vsel %vm171_vm0, %v467_v7, %v1942_v39  ;;  %v478_v17 = vperm.slane %v470_v11, %v1959_v53 }
 0x12b   :  { %v474_v18 = vperm.slane %v468_v16, %v1959_v53  ;;  %v227_v19 = vrot.slane %v161_v12, 4  ;;  %v230_v20 = vsel %vm171_vm0, %v161_v12, %v229_v57  ;;  %v240_v21 = vsel %vm171_vm0, %v239_v56, %v155_v13 }
 0x12c   :  { %v503_v63 = vrot.slane %v490_v14, 4  ;;  %v505_v22 = vrot.slane %v478_v17, 4  ;;  %v238_v23 = vperm.slane %v230_v20, %v1959_v53  ;;  %v241_v24 = vrot.slane %v155_v13, 4 }
 0x12d   :  { %v493_v25 = vrot.slane %v474_v18, 4  ;;  %v228_v26 = vsel %vm171_vm0, %v227_v19, %v1950_v41  ;;  %v246_v39 = vperm.slane %v240_v21, %v1959_v53  ;;  %v492_v36 = vsel %vm171_vm0, %v491_v15, %v474_v18 }
 0x12e   :  { %v504_v29 = vsel %vm171_vm0, %v503_v63, %v478_v17  ;;  %v506_v30 = vsel %vm171_vm0, %v490_v14, %v505_v22  ;;  %v234_v31 = vperm.slane %v228_v26, %v1959_v53  ;;  %v265_v43 = vrot.slane %v238_v23, 4 }
 0x12f   :  { %v494_v37 = vsel %vm171_vm0, %v486_v6, %v493_v25  ;;  %v510_v38 = vperm.slane %v504_v29, %v1970_v2  ;;  %v514_v41 = vperm.slane %v506_v30, %v1970_v2  ;;  %v242_v45 = vsel %vm171_vm0, %v167_v44, %v241_v24  ;;  %v125_v29 = vld [vmem:[%s2563_s4 + $0x70] sm:$0xff] }
 0x130   :  { %v502_v40 = vperm.slane %v494_v37, %v1970_v2  ;;  %v253_v42 = vrot.slane %v234_v31, 4  ;;  %v250_v50 = vperm.slane %v242_v45, %v1959_v53  ;;  %v251_v52 = vrot.slane %v246_v39, 4 }
 0x131   :  { %v519_v46 = vrot.slane %v510_v38, 4  ;;  %v521_v47 = vrot.slane %v514_v41, 4  ;;  %v540_v28 = vsel %vm171_vm0, %v539_v0, %v464_v59  ;;  %v226_v49 = vsel %vm171_vm0, 0.0, %v2024_v5 }
 0x132   :  { %v254_v54 = vsel %vm171_vm0, %v246_v39, %v253_v42  ;;  %v529_v55 = vsel %vm171_vm0, %v528_v8, %v460_v27  ;;  %v224_v56 = vsel %vm171_vm0, 0.0, %v223_v4  ;;  %v2062_v57 = vperm.slane %v492_v36, %v1970_v2  ;;  %v124_v42 = vld [vmem:[%s2563_s4 + $0x68] sm:$0xff] }
 0x133   :  { %v522_v44 = vsel %vm171_vm0, 0.0, %v521_v47  ;;  %v252_v58 = vsel %vm171_vm0, %v251_v52, %v234_v31  ;;  %v2066_v61 = vrot.slane %v502_v40, 4  ;;  %v520_v59 = vsel %vm171_vm0, 0.0, %v519_v46 }
 0x134   :  { %v258_v0 = vperm.slane %v252_v58, %v1970_v2  ;;  %v527_v3 = vperm.slane %v523_v35, %v1959_v53  ;;  %v262_v6 = vperm.slane %v254_v54, %v1970_v2  ;;  %v263_v7 = vrot.slane %v250_v50, 4 }
 0x135   :  { %v266_v4 = vsel %vm171_vm0, %v250_v50, %v265_v43  ;;  %v533_v8 = vperm.slane %v529_v55, %v1959_v53  ;;  %v588_v10 = vsel %vm171_vm0, %v521_v47, %v510_v38  ;;  %v593_v11 = vrot.slane %v522_v44, 4 }
 0x136   :  { %v274_v12 = vperm.slane %v266_v4, %v1970_v2  ;;  %v275_v13 = vrot.slane %v258_v0, 4  ;;  %v264_v14 = vsel %vm171_vm0, %v263_v7, %v238_v23  ;;  %v277_v15 = vrot.slane %v262_v6, 4  ;;  %v122_v7 = vld [vmem:[%s2563_s4 + $0x58] sm:$0xff] }
 0x137   :  { %v544_v16 = vperm.slane %v540_v28, %v1959_v53  ;;  %v545_v17 = vrot.slane %v533_v8, 4  ;;  %v299_v18 = vrot.slane %v226_v49, 4  ;;  %v2079_v19 = vperm.slane %v264_v14, %v1970_v2 }
 0x138   :  { %v2081_v20 = vrot.slane %v274_v12, 4  ;;  %v538_v21 = vperm.slane %v2018_v62, %v1959_v53  ;;  %v515_v63 = vrot.slane %v2062_v57, 4  ;;  %v518_v22 = vsel %vm171_vm0, 0.0, %v2066_v61  ;;  %v126_v62 = vld [vmem:[%s2563_s4 + $0x78] sm:$0xff] }
 0x139   :  { %v546_v23 = vsel %vm171_vm0, %v545_v17, %v527_v3  ;;  %v557_v24 = vrot.slane %v544_v16, 4  ;;  %v2090_v25 = vperm.slane %v588_v10, %v1959_v53  ;;  %v594_v26 = vsel %vm171_vm0, %v593_v11, %v520_v59  ;;  %127 = vmatpush.msra.mxu2 %v126_v62 }
 0x13a   :  { %v2094_v39 = vsel %vm171_vm0, 0.0, %v275_v13  ;;  %v547_v27 = vrot.slane %v527_v3, 4  ;;  %v2103_v30 = vsel %vm171_vm0, 0.0, %v277_v15  ;;  %v337_v31 = vsel %vm171_vm0, %v277_v15, %v258_v0  ;;  %v120_v15 = vld [vmem:[%s2563_s4 + $0x48] sm:$0xff] }
 0x13b   :  { %v552_v35 = vperm.slane %v546_v23, %v1970_v2  ;;  %v558_v36 = vsel %vm171_vm0, %v557_v24, %v538_v21  ;;  %v279_v37 = vrot.slane %v2079_v19, 4  ;;  %v2111_v38 = vsel %vm171_vm0, 0.0, %v2081_v20  ;;  %128 = vmatpush.msra.mxu2 %v125_v29 }
 0x13c   :  { %v559_v41 = vrot.slane %v538_v21, 4  ;;  %v564_v40 = vperm.slane %v558_v36, %v1970_v2  ;;  %v283_v45 = vsel %vm171_vm0, %v2000_v48, %v1993_v32  ;;  %v289_v46 = vsel %vm171_vm0, %v288_v9, %v2021_v1  ;;  %v123_v32 = vld [vmem:[%s2563_s4 + $0x60] sm:$0xff] }
 0x13d   :  { %v571_v43 = vrot.slane %v552_v35, 4  ;;  %v294_v47 = vsel %vm171_vm0, %v2024_v5, %v2004_v51  ;;  %v2128_v52 = vperm.slane %v289_v46, %v1959_v53  ;;  %v300_v28 = vsel %vm171_vm0, %v299_v18, %v224_v56  ;;  %129 = vmatpush.msra.mxu2 %v124_v42 }
 0x13e   :  { %v569_v50 = vrot.slane %v564_v40, 4  ;;  %v2135_v48 = vperm.slane %v337_v31, %v1959_v53  ;;  %v2139_v1 = vperm.slane %v300_v28, %v1959_v53  ;;  %v548_v51 = vsel %vm171_vm0, %v533_v8, %v547_v27 }
 0x13f   :  { %v572_v60 = vsel %vm171_vm0, %v564_v40, %v571_v43  ;;  %v2144_v9 = vperm.slane %v283_v45, %v1959_v53  ;;  %v2147_v49 = vperm.slane %v294_v47, %v1959_v53  ;;  %v305_v54 = vrot.slane %v2128_v52, 4  ;;  %130 = vmatpush.msra.mxu2 %v123_v32  ;;  %v118_v40 = vld [vmem:[%s2563_s4 + $0x38] sm:$0xff]  ;;  %v117_v47 = vld [vmem:[%s2563_s4 + $0x30] sm:$0xff] }
 0x140   :  { %v570_v5 = vsel %vm171_vm0, %v569_v50, %v552_v35  ;;  %v317_v55 = vrot.slane %v2139_v1, 4  ;;  %v2153_v56 = vperm.slane %v548_v51, %v1970_v2  ;;  %v560_v44 = vsel %vm171_vm0, %v544_v16, %v559_v41 }
 0x141   :  { %1662 = vmatpush.xpose.msk.msra.mxu3 %vm871_vm1, %v570_v5  ;;  %v577_v58 = vsel %vm171_vm0, %v2066_v61, %v2062_v57  ;;  %v2161_v59 = vperm.slane %v560_v44, %v1970_v2  ;;  %v516_v0 = vsel %vm171_vm0, 0.0, %v515_v63  ;;  %v582_v6 = vrot.slane %v518_v22, 4  ;;  %v121_v57 = vld [vmem:[%s2563_s4 + $0x50] sm:$0xff]  ;;  %131 = vmatpush.msra.mxu2 %v122_v7 }
 0x142   :  { %v2165_v3 = vperm.slane %v577_v58, %v1959_v53  ;;  %v306_v61 = vsel %vm171_vm0, %v305_v54, %v2144_v9  ;;  %v318_v4 = vsel %vm171_vm0, %v317_v55, %v2147_v49  ;;  %v598_v8 = vperm.slane %v594_v26, %v1959_v53  ;;  %v119_v26 = vld [vmem:[%s2563_s4 + $0x40] sm:$0xff]  ;;  %v116_v54 = vld [vmem:[%s2563_s4 + $0x28] sm:$0xff] }
 0x143   :  { %v613_v10 = vrot.slane %v2090_v25, 4  ;;  %v324_v11 = vperm.slane %v318_v4, %v1970_v2  ;;  %v573_v12 = vrot.slane %v2161_v59, 4  ;;  %v583_v13 = vsel %vm171_vm0, %v582_v6, %v516_v0  ;;  %132 = vmatpush.msra.mxu2 %v121_v57 }
 0x144   :  { %v601_v14 = vrot.slane %v2165_v3, 4  ;;  %v342_v16 = vrot.slane %v2103_v30, 4  ;;  %v353_v17 = vrot.slane %v2111_v38, 4  ;;  %v587_v18 = vperm.slane %v583_v13, %v1959_v53 }
 0x145   :  { %1664 = vmatpush.xpose.msk.msrb.mxu3 %vm871_vm1, %v572_v60  ;;  %v614_v21 = vsel %vm171_vm0, %v598_v8, %v613_v10  ;;  %v348_v63 = vsel %vm171_vm0, %v2081_v20, %v2079_v19  ;;  %v312_v22 = vperm.slane %v306_v61, %v1970_v2  ;;  %v329_v23 = vrot.slane %v324_v11, 4  ;;  %133 = vmatpush.msra.mxu2 %v120_v15  ;;  %v114_v10 = vld [vmem:[%s2563_s4 + $0x18] sm:$0xff]  ;;  %v112_v15 = vld [vmem:[%s2563_s4 + $0x8] sm:$0xff] }
 0x146   :  { %v622_v24 = vperm.slane %v614_v21, %v1970_v2  ;;  %v319_v27 = vrot.slane %v2147_v49, 4  ;;  %v602_v62 = vsel %vm171_vm0, %v587_v18, %v601_v14  ;;  %v611_v29 = vrot.slane %v598_v8, 4 }
 0x147   :  { %v280_v30 = vsel %vm171_vm0, 0.0, %v279_v37  ;;  %v330_v31 = vsel %vm171_vm0, %v329_v23, %v312_v22  ;;  %v574_v19 = vsel %vm171_vm0, %v573_v12, %v2153_v56  ;;  %v610_v20 = vperm.slane %v602_v62, %v1970_v2  ;;  %134 = vmatpush.msra.mxu2 %v119_v26  ;;  %v113_v12 = vld [vmem:[%s2563_s4 + $0x10] sm:$0xff] }
 0x148   :  { %v627_v35 = vrot.slane %v622_v24, 4  ;;  %1663 = vmatmul.msk.f32.vlgmr.msra.gmra.mxu3 %vm871_vm1, %v330_v31  ;;  %v343_v36 = vsel %vm171_vm0, %v342_v16, %v2094_v39  ;;  %v2209_v38 = vperm.slane %v348_v63, %v1959_v53  ;;  %v354_v41 = vsel %vm171_vm0, %v353_v17, %v280_v30 }
 0x149   :  { %v361_v37 = vrot.slane %v2135_v48, 4  ;;  %1666 = vmatpush.xpose.msk.msra.mxu3 %vm871_vm1, %v574_v19  ;;  %v629_v43 = vrot.slane %v610_v20, 4  ;;  %v2219_v45 = vperm.slane %v343_v36, %v1959_v53  ;;  %v358_v39 = vperm.slane %v354_v41, %v1959_v53  ;;  %135 = vmatpush.msra.mxu2 %v118_v40 }
 0x14a   :  { %v628_v42 = vsel %vm171_vm0, %v627_v35, %v610_v20  ;;  %v373_v46 = vrot.slane %v2209_v38, 4  ;;  %v331_v28 = vrot.slane %v312_v22, 4  ;;  %v575_v60 = vrot.slane %v2153_v56, 4 }
 0x14b   :  { %1674 = vmatpush.xpose.msk.msrb.mxu0 %vm871_vm1, %v628_v42  ;;  %v630_v50 = vsel %vm171_vm0, %v622_v24, %v629_v43  ;;  %v362_v32 = vsel %vm171_vm0, %v2219_v45, %v361_v37  ;;  %v320_v49 = vsel %vm171_vm0, %v2139_v1, %v319_v27  ;;  %v599_v55 = vrot.slane %v587_v18, 4  ;;  %136 = vmatpush.msra.mxu2 %v117_v47  ;;  %v115_v1 = vld [vmem:[%s2563_s4 + $0x20] sm:$0xff] }
 0x14c   :  { %1676 = vmatpush.xpose.msk.msrb.mxu1 %vm871_vm1, %v630_v50  ;;  %v370_v51 = vperm.slane %v362_v32, %v1970_v2  ;;  %v374_v5 = vsel %vm171_vm0, %v358_v39, %v373_v46  ;;  %v612_v58 = vsel %vm171_vm0, %v611_v29, %v2090_v25  ;;  %v307_v56 = vrot.slane %v2144_v9, 4 }
 0x14d   :  { %v382_v44 = vperm.slane %v374_v5, %v1970_v2  ;;  %v332_v6 = vsel %vm171_vm0, %v324_v11, %v331_v28  ;;  %v328_v57 = vperm.slane %v320_v49, %v1970_v2  ;;  %137 = vmatpush.msra.mxu2 %v116_v54  ;;  %v576_v61 = vsel %vm171_vm0, %v2161_v59, %v575_v60 }
 0x14e   :  { %v389_v0 = vrot.slane %v370_v51, 4  ;;  %v618_v9 = vperm.slane %v612_v58, %v1970_v2  ;;  %v600_v8 = vsel %vm171_vm0, %v599_v55, %v2165_v3  ;;  %v308_v59 = vsel %vm171_vm0, %v2128_v52, %v307_v56  ;;  %v111_v52 = vld [vmem:[%s2563_s4] sm:$0xff]  ;;  %s1777_s4 = smov 16  }
 0x14f   :  { %v387_v7 = vrot.slane %v382_v44, 4  ;;  %138 = vmatpush.msra.mxu2 %v115_v1  ;;  %v333_v11 = vrot.slane %v328_v57, 4  ;;  %v606_v13 = vperm.slane %v600_v8, %v1970_v2  ;;  %v316_v3 = vperm.slane %v308_v59, %v1970_v2 }
 0x150   :  { %1665 = vmatmul.msk.f32.vlgmr.msrb.gmra.mxu3 %vm871_vm1, %v332_v6  ;;  %v390_v25 = vsel %vm171_vm0, %v382_v44, %v389_v0  ;;  %v623_v14 = vrot.slane %v618_v9, 4  ;;  %v371_v17 = vrot.slane %v358_v39, 4  ;;  %v359_v63 = vrot.slane %v2219_v45, 4 }
 0x151   :  { %1668 = vmatpush.xpose.msk.msrb.mxu3 %vm871_vm1, %v576_v61  ;;  %v388_v4 = vsel %vm171_vm0, %v387_v7, %v370_v51  ;;  %1677 = vmatmul.msk.f32.vlgmr.msrb.gmra.mxu1 %vm871_vm1, %v390_v25  ;;  %v334_v16 = vsel %vm171_vm0, %v333_v11, %v316_v3  ;;  %v335_v21 = vrot.slane %v316_v3, 4  ;;  %v625_v22 = vrot.slane %v606_v13, 4 }
 0x152   :  { %1675 = vmatmul.msk.f32.vlgmr.msrb.gmra.mxu0 %vm871_vm1, %v388_v4  ;;  %139 = vmatpush.msra.mxu2 %v114_v10  ;;  %v624_v18 = vsel %vm171_vm0, %v623_v14, %v606_v13  ;;  %v372_v23 = vsel %vm171_vm0, %v371_v17, %v2209_v38  ;;  %v360_v62 = vsel %vm171_vm0, %v359_v63, %v2135_v48 }
 0x153   :  { %v336_v24 = vsel %vm171_vm0, %v328_v57, %v335_v21  ;;  %v378_v26 = vperm.slane %v372_v23, %v1970_v2  ;;  %v626_v27 = vsel %vm171_vm0, %v618_v9, %v625_v22 }
 0x154   :  { %140 = vmatpush.msra.mxu2 %v113_v12 }
 0x155   :  { %v383_v29 = vrot.slane %v378_v26, 4 }
 0x156   :  { %141 = vmatpush.msra.mxu2 %v112_v15 }
 0x158   :  { %1667 = vmatmul.msk.f32.vlgmr.msra.gmra.mxu3 %vm871_vm1, %v334_v16  ;;  %142 = vmatpush.msra.mxu2 %v111_v52 }
 0x159   :  { %1670 = vmatpush.xpose.msk.msra.mxu3 %vm871_vm1, %v624_v18  ;;  %143 = vmatmul.f32.vlgmr.msra.gmra.mxu2 %v1924_v33  ;;  %v366_v33 = vperm.slane %v360_v62, %v1970_v2 }
 0x15b   :  { %v384_v30 = vsel %vm171_vm0, %v383_v29, %v366_v33  ;;  %v385_v31 = vrot.slane %v366_v33, 4 }
 0x15d   :  { %v386_v19 = vsel %vm171_vm0, %v378_v26, %v385_v31 }
 0x160   :  { %1669 = vmatmul.msk.f32.vlgmr.msrb.gmra.mxu3 %vm871_vm1, %v336_v24 }
 0x161   :  { %1672 = vmatpush.xpose.msk.msrb.mxu3 %vm871_vm1, %v626_v27  ;;  %146 = vmatmul.f32.gmra.mxu2 %v1930_v34 }
 0x168   :  { %1671 = vmatmul.msk.f32.vlgmr.msra.gmra.mxu3 %vm871_vm1, %v384_v30 }
 0x170   :  { %1673 = vmatmul.msk.f32.vlgmr.msrb.gmra.mxu3 %vm871_vm1, %v386_v19 }
 0x1cb   :  { %v895_v20 = vpop.f32.mrf.mxu3 }
 0x1cc   :  { %v1080_v35 = vsel %vm871_vm1, %v895_v20, -inf }
 0x1cd   :  { %1081 = vmax.xlane.f32.xlu0 %v1080_v35 }
 0x1ce   :  { %v2297_v36 = vpop.f32.mrf.mxu1 }
 0x1cf   :  { %v1051_v48 = vpop.f32.mrf.mxu0  ;;  %v1101_v34 = vsel %vm871_vm1, %v2297_v36, -inf }
 0x1d0   :  { %v1098_v38 = vsel %vm871_vm1, %v1051_v48, -inf }
 0x1d1   :  { %1099 = vmax.xlane.f32.xlu2 %v1098_v38 }
 0x1d3   :  { %v921_v41 = vpop.f32.mrf.mxu3 }
 0x1d4   :  { %v1083_v37 = vsel %vm871_vm1, %v921_v41, -inf }
 0x1d5   :  { %1084 = vmax.xlane.f32.xlu1 %v1083_v37  ;;  %1102 = vmax.xlane.f32.xlu0 %v1101_v34 }
 0x1db   :  { %v947_v40 = vpop.f32.mrf.mxu3 }
 0x1dc   :  { %v1086_v42 = vsel %vm871_vm1, %v947_v40, -inf  ;;  %v2306_v47 = vpop.f32.mrf.mxu2 }
 0x1dd   :  { %1087 = vmax.xlane.f32.xlu2 %v1086_v42 }
 0x1e3   :  { %v973_v43 = vpop.f32.mrf.mxu3 }
 0x1e4   :  { %v1089_v45 = vsel %vm871_vm1, %v973_v43, -inf  ;;  %v2309_v32 = vpop.f32.mrf.mxu2 }
 0x1e5   :  { %1090 = vmax.xlane.f32.xlu2 %v1089_v45  ;;  %v1703_v60 = vpack.i.bf16 %v2309_v32, %v2306_v47  ;;  %v709_v34 = vrot.slane %v2309_v32, 4 }
 0x1eb   :  { %v999_v39 = vpop.f32.mrf.mxu3 }
 0x1ec   :  { %v1092_v46 = vsel %vm871_vm1, %v999_v39, -inf }
 0x1ed   :  { %1093 = vmax.xlane.f32.xlu0 %v1092_v46 }
 0x1f3   :  { %v1025_v50 = vpop.f32.mrf.mxu3 }
 0x1f4   :  { %v1095_v28 = vsel %vm871_vm1, %v1025_v50, -inf }
 0x1f5   :  { %1096 = vmax.xlane.f32.xlu1 %v1095_v28 }
 0x1fd   :  { %1704 = vrot.lane.b32.xlu2 %v1703_v60, %s1774_s27 }
 0x201   :  { %1709 = vrot.lane.b32.xlu0 %v1703_v60, %s1772_s25  ;;  %s1778_s25 = smov 24  }
 0x20e   :  { %1699 = vrot.lane.b32.xlu1 %v1703_v60, %s1773_s26  ;;  %s1779_s26 = smov 8  }
 0x240   :  { %v1082_v51 = vpop.xlane.xlu0 %1081 }
 0x241   :  { %v1104_v5 = vsub.f32 %v895_v20, %v1082_v51 }
 0x243   :  { %v1112_v49 = vmul.f32 1.442695, %v1104_v5 }
 0x244   :  { %v1100_v54 = vpop.xlane.xlu2 %1099 }
 0x245   :  { %1714 = vpow2.f32 %v1112_v49  ;;  %v1110_v10 = vsub.f32 %v1051_v48, %v1100_v54 }
 0x247   :  { %v1124_v12 = vmul.f32 1.442695, %v1110_v10 }
 0x248   :  { %v1085_v55 = vpop.xlane.xlu1 %1084  ;;  %v1103_v25 = vpop.xlane.xlu0 %1102 }
 0x249   :  { %v1105_v44 = vsub.f32 %v921_v41, %v1085_v55  ;;  %v1111_v15 = vsub.f32 %v2297_v36, %v1103_v25  ;;  %v653_v41 = vrot.slane %v2306_v47, 4 }
 0x24b   :  { %v2316_v58 = vpop.eup %1714  ;;  %v1114_v56 = vmul.f32 1.442695, %v1105_v44  ;;  %v1126_v17 = vmul.f32 1.442695, %v1111_v15 }
 0x24c   :  { %v1128_v0 = vsel %vm871_vm1, %v2316_v58, 0.0 }
 0x24d   :  { %1716 = vpow2.f32 %v1114_v56  ;;  %1129 = vadd.xlane.f32.xlu1 %v1128_v0 }
 0x250   :  { %v1088_v6 = vpop.xlane.xlu2 %1087 }
 0x251   :  { %v1106_v7 = vsub.f32 %v947_v40, %v1088_v6 }
 0x253   :  { %v2320_v57 = vpop.eup %1716  ;;  %v1116_v1 = vmul.f32 1.442695, %v1106_v7 }
 0x254   :  { %v1131_v61 = vsel %vm871_vm1, %v2320_v57, 0.0 }
 0x255   :  { %1718 = vpow2.f32 %v1116_v1  ;;  %1132 = vadd.xlane.f32.xlu0 %v1131_v61 }
 0x258   :  { %v1091_v9 = vpop.xlane.xlu2 %1090 }
 0x259   :  { %v1107_v4 = vsub.f32 %v973_v43, %v1091_v9 }
 0x25b   :  { %v2324_v8 = vpop.eup %1718  ;;  %v1118_v59 = vmul.f32 1.442695, %v1107_v4 }
 0x25c   :  { %v1134_v11 = vsel %vm871_vm1, %v2324_v8, 0.0 }
 0x25d   :  { %1720 = vpow2.f32 %v1118_v59  ;;  %1135 = vadd.xlane.f32.xlu2 %v1134_v11 }
 0x25e   :  { %1722 = vpow2.f32 %v1124_v12 }
 0x260   :  { %v1094_v13 = vpop.xlane.xlu0 %1093  ;;  %v1705_v62 = vpop.permute.xlu2 %1704 }
 0x261   :  { %v1108_v14 = vsub.f32 %v999_v39, %v1094_v13  ;;  %v1707_v30 = vunpack.i.h.bf16 %v1705_v62  ;;  %v1706_v31 = vunpack.i.l.bf16 %v1705_v62 }
 0x263   :  { %v2328_v3 = vpop.eup %1720  ;;  %v1120_v16 = vmul.f32 1.442695, %v1108_v14  ;;  %v707_v35 = vrot.slane %v1707_v30, 4  ;;  %v651_v48 = vrot.slane %v1706_v31, 4  ;;  %v710_v40 = vsel %vm171_vm0, %v1707_v30, %v709_v34 }
 0x264   :  { %v1137_v52 = vsel %vm871_vm1, %v2328_v3, 0.0  ;;  %v2333_v21 = vpop.eup %1722  ;;  %v654_v43 = vsel %vm171_vm0, %v1706_v31, %v653_v41  ;;  %v718_v28 = vperm.slane %v710_v40, %v1959_v53 }
 0x265   :  { %1138 = vadd.xlane.f32.xlu1 %v1137_v52  ;;  %1724 = vpow2.f32 %v1120_v16  ;;  %v1146_v23 = vsel %vm871_vm1, %v2333_v21, 0.0  ;;  %v708_v37 = vsel %vm171_vm0, %v707_v35, %v2309_v32  ;;  %v652_v42 = vsel %vm171_vm0, %v651_v48, %v2306_v47 }
 0x266   :  { %1726 = vpow2.f32 %v1126_v17  ;;  %v714_v46 = vperm.slane %v708_v37, %v1959_v53  ;;  %v658_v60 = vperm.slane %v652_v42, %v1959_v53  ;;  %v662_v32 = vperm.slane %v654_v43, %v1959_v53 }
 0x267   :  { %v745_v6 = vrot.slane %v718_v28, 4 }
 0x268   :  { %v1097_v18 = vpop.xlane.xlu1 %1096  ;;  %v733_v44 = vrot.slane %v714_v46, 4  ;;  %v677_v7 = vrot.slane %v658_v60, 4  ;;  %v689_v59 = vrot.slane %v662_v32, 4 }
 0x269   :  { %v1109_v63 = vsub.f32 %v1025_v50, %v1097_v18 }
 0x26b   :  { %v1122_v22 = vmul.f32 1.442695, %v1109_v63  ;;  %v2337_v24 = vpop.eup %1724 }
 0x26c   :  { %v1140_v26 = vsel %vm871_vm1, %v2337_v24, 0.0  ;;  %v2341_v27 = vpop.eup %1726 }
 0x26d   :  { %1728 = vpow2.f32 %v1122_v22  ;;  %1147 = vadd.xlane.f32.xlu1 %v1146_v23  ;;  %1141 = vadd.xlane.f32.xlu0 %v1140_v26  ;;  %v1149_v19 = vsel %vm871_vm1, %v2341_v27, 0.0 }
 0x273   :  { %v2343_v33 = vpop.eup %1728  ;;  %v1710_v20 = vpop.permute.xlu0 %1709 }
 0x274   :  { %v1143_v29 = vsel %vm871_vm1, %v2343_v33, 0.0  ;;  %v1712_v36 = vunpack.i.h.bf16 %v1710_v20  ;;  %v1711_v38 = vunpack.i.l.bf16 %v1710_v20 }
 0x275   :  { %1144 = vadd.xlane.f32.xlu2 %v1143_v29  ;;  %1150 = vadd.xlane.f32.xlu0 %v1149_v19 }
 0x276   :  { %v719_v45 = vrot.slane %v1712_v36, 4  ;;  %v663_v39 = vrot.slane %v1711_v38, 4 }
 0x280   :  { %v1700_v50 = vpop.permute.xlu1 %1699 }
 0x281   :  { %v1702_v51 = vunpack.i.h.bf16 %v1700_v50  ;;  %v1701_v5 = vunpack.i.l.bf16 %v1700_v50 }
 0x283   :  { %v720_v49 = vsel %vm171_vm0, %v719_v45, %v1702_v51  ;;  %v721_v54 = vrot.slane %v1702_v51, 4  ;;  %v664_v47 = vsel %vm171_vm0, %v663_v39, %v1701_v5  ;;  %v665_v55 = vrot.slane %v1701_v5, 4 }
 0x284   :  { %v726_v56 = vperm.slane %v720_v49, %v1959_v53  ;;  %v670_v0 = vperm.slane %v664_v47, %v1959_v53 }
 0x285   :  { %v722_v1 = vsel %vm171_vm0, %v1712_v36, %v721_v54  ;;  %v666_v61 = vsel %vm171_vm0, %v1711_v38, %v665_v55 }
 0x286   :  { %v730_v25 = vperm.slane %v722_v1, %v1959_v53  ;;  %v731_v9 = vrot.slane %v726_v56, 4  ;;  %v734_v4 = vsel %vm171_vm0, %v726_v56, %v733_v44  ;;  %v674_v10 = vperm.slane %v666_v61, %v1959_v53 }
 0x287   :  { %v742_v11 = vperm.slane %v734_v4, %v1970_v2  ;;  %v675_v12 = vrot.slane %v670_v0, 4  ;;  %v678_v13 = vsel %vm171_vm0, %v670_v0, %v677_v7 }
 0x288   :  { %v732_v14 = vsel %vm171_vm0, %v731_v9, %v714_v46  ;;  %v743_v15 = vrot.slane %v730_v25, 4  ;;  %v746_v16 = vsel %vm171_vm0, %v730_v25, %v745_v6  ;;  %v686_v52 = vperm.slane %v678_v13, %v1970_v2 }
 0x289   :  { %v738_v17 = vperm.slane %v732_v14, %v1970_v2  ;;  %v754_v18 = vperm.slane %v746_v16, %v1970_v2  ;;  %v757_v63 = vrot.slane %v742_v11, 4  ;;  %v676_v22 = vsel %vm171_vm0, %v675_v12, %v658_v60 }
 0x28a   :  { %v744_v23 = vsel %vm171_vm0, %v743_v15, %v718_v28  ;;  %v682_v26 = vperm.slane %v676_v22, %v1970_v2  ;;  %v687_v62 = vrot.slane %v674_v10, 4  ;;  %v690_v29 = vsel %vm171_vm0, %v674_v10, %v689_v59 }
 0x28b   :  { %v750_v30 = vperm.slane %v744_v23, %v1970_v2  ;;  %v755_v31 = vrot.slane %v738_v17, 4  ;;  %v758_v19 = vsel %vm171_vm0, 0.0, %v757_v63  ;;  %v761_v20 = vrot.slane %v754_v18, 4 }
 0x28c   :  { %v817_v35 = vsel %vm171_vm0, %v757_v63, %v738_v17  ;;  %v822_v48 = vrot.slane %v758_v19, 4  ;;  %v688_v36 = vsel %vm171_vm0, %v687_v62, %v662_v32  ;;  %v698_v38 = vperm.slane %v690_v29, %v1970_v2 }
 0x28d   :  { %v762_v34 = vsel %vm171_vm0, 0.0, %v761_v20  ;;  %v694_v41 = vperm.slane %v688_v36, %v1970_v2  ;;  %v699_v37 = vrot.slane %v682_v26, 4  ;;  %v701_v40 = vrot.slane %v686_v52, 4 }
 0x28e   :  { %v833_v42 = vrot.slane %v762_v34, 4  ;;  %v705_v43 = vrot.slane %v698_v38, 4  ;;  %v756_v45 = vsel %vm171_vm0, 0.0, %v755_v31  ;;  %v759_v39 = vrot.slane %v750_v30, 4 }
 0x28f   :  { %v702_v46 = vsel %vm171_vm0, 0.0, %v701_v40  ;;  %v763_v50 = vsel %vm171_vm0, %v701_v40, %v682_v26  ;;  %v700_v28 = vsel %vm171_vm0, 0.0, %v699_v37  ;;  %v703_v60 = vrot.slane %v694_v41, 4 }
 0x290   :  { %v706_v51 = vsel %vm171_vm0, 0.0, %v705_v43  ;;  %v768_v5 = vrot.slane %v702_v46, 4  ;;  %v767_v32 = vperm.slane %v763_v50, %v1959_v53  ;;  %v774_v49 = vsel %vm171_vm0, %v705_v43, %v694_v41 }
 0x291   :  { %v779_v54 = vrot.slane %v706_v51, 4  ;;  %v704_v47 = vsel %vm171_vm0, 0.0, %v703_v60  ;;  %v778_v55 = vperm.slane %v774_v49, %v1959_v53  ;;  %v760_v44 = vsel %vm171_vm0, 0.0, %v759_v39 }
 0x292   :  { %v769_v56 = vsel %vm171_vm0, %v768_v5, %v700_v28  ;;  %v787_v0 = vrot.slane %v767_v32, 4  ;;  %v821_v6 = vperm.slane %v817_v35, %v1959_v53  ;;  %v823_v7 = vsel %vm171_vm0, %v822_v48, %v756_v45 }
 0x293   :  { %v773_v1 = vperm.slane %v769_v56, %v1959_v53  ;;  %v780_v61 = vsel %vm171_vm0, %v779_v54, %v704_v47  ;;  %v799_v25 = vrot.slane %v778_v55, 4  ;;  %v827_v9 = vperm.slane %v823_v7, %v1959_v53 }
 0x294   :  { %v784_v4 = vperm.slane %v780_v61, %v1959_v53  ;;  %v828_v10 = vsel %vm171_vm0, %v761_v20, %v750_v30  ;;  %v834_v59 = vsel %vm171_vm0, %v833_v42, %v760_v44  ;;  %v841_v11 = vrot.slane %v821_v6, 4 }
 0x295   :  { %v788_v12 = vsel %vm171_vm0, %v773_v1, %v787_v0  ;;  %v832_v13 = vperm.slane %v828_v10, %v1959_v53  ;;  %v838_v14 = vperm.slane %v834_v59, %v1959_v53  ;;  %v785_v15 = vrot.slane %v773_v1, 4 }
 0x296   :  { %v796_v16 = vperm.slane %v788_v12, %v1970_v2  ;;  %v800_v52 = vsel %vm171_vm0, %v784_v4, %v799_v25  ;;  %v842_v17 = vsel %vm171_vm0, %v827_v9, %v841_v11  ;;  %v797_v18 = vrot.slane %v784_v4, 4 }
 0x297   :  { %v808_v63 = vperm.slane %v800_v52, %v1970_v2  ;;  %v850_v22 = vperm.slane %v842_v17, %v1970_v2  ;;  %v853_v23 = vrot.slane %v832_v13, 4  ;;  %v786_v26 = vsel %vm171_vm0, %v785_v15, %v767_v32 }
 0x298   :  { %v815_v62 = vrot.slane %v796_v16, 4  ;;  %v792_v29 = vperm.slane %v786_v26, %v1970_v2  ;;  %v798_v30 = vsel %vm171_vm0, %v797_v18, %v778_v55  ;;  %v839_v31 = vrot.slane %v827_v9, 4 }
 0x299   :  { %v854_v19 = vsel %vm171_vm0, %v838_v14, %v853_v23  ;;  %v869_v20 = vrot.slane %v850_v22, 4  ;;  %v813_v35 = vrot.slane %v808_v63, 4  ;;  %v804_v48 = vperm.slane %v798_v30, %v1970_v2 }
 0x29a   :  { %v816_v36 = vsel %vm171_vm0, %v808_v63, %v815_v62  ;;  %v862_v38 = vperm.slane %v854_v19, %v1970_v2  ;;  %v851_v34 = vrot.slane %v838_v14, 4  ;;  %v811_v40 = vrot.slane %v792_v29, 4 }
 0x29b   :  { %1255 = vmatpush.msra.mxu1 %v816_v36  ;;  %v814_v41 = vsel %vm171_vm0, %v813_v35, %v796_v16  ;;  %v809_v37 = vrot.slane %v804_v48, 4  ;;  %v840_v45 = vsel %vm171_vm0, %v839_v31, %v821_v6 }
 0x29c   :  { %v870_v42 = vsel %vm171_vm0, %v862_v38, %v869_v20  ;;  %1232 = vmatpush.msra.mxu0 %v814_v41  ;;  %v867_v43 = vrot.slane %v862_v38, 4  ;;  %v852_v39 = vsel %vm171_vm0, %v851_v34, %v832_v13  ;;  %v812_v60 = vsel %vm171_vm0, %v804_v48, %v811_v40 }
 0x29d   :  { %1347 = vmatpush.msrb.mxu1 %v870_v42  ;;  %v810_v46 = vsel %vm171_vm0, %v809_v37, %v792_v29  ;;  %v858_v50 = vperm.slane %v852_v39, %v1970_v2  ;;  %v846_v51 = vperm.slane %v840_v45, %v1970_v2 }
 0x29e   :  { %v868_v28 = vsel %vm171_vm0, %v867_v43, %v850_v22  ;;  %1186 = vmatpush.msra.mxu3 %v810_v46 }
 0x29f   :  { %1324 = vmatpush.msrb.mxu0 %v868_v28  ;;  %v863_v5 = vrot.slane %v858_v50, 4  ;;  %v865_v54 = vrot.slane %v846_v51, 4 }
 0x2a0   :  { %1209 = vmatpush.msrb.mxu3 %v812_v60 }
 0x2a1   :  { %v864_v32 = vsel %vm171_vm0, %v863_v5, %v846_v51  ;;  %v866_v56 = vsel %vm171_vm0, %v858_v50, %v865_v54 }
 0x2a2   :  { %1278 = vmatpush.msrb.mxu2 %v864_v32 }
 0x2c0   :  { %v1130_v49 = vpop.xlane.xlu1 %1129 }
 0x2c1   :  { %1730 = vrcp.f32 %v1130_v49 }
 0x2c7   :  { %v1731_v47 = vpop.eup %1730 }
 0x2c8   :  { %v1160_v55 = vmul.f32 %v1731_v47, %v2316_v58  ;;  %v1133_v44 = vpop.xlane.xlu0 %1132 }
 0x2c9   :  { %1732 = vrcp.f32 %v1133_v44 }
 0x2ca   :  { %1678 = vmatmul.msk.f32.vlgmr.msra.gmra.mxu3 %vm871_vm1, %v1160_v55 }
 0x2cb   :  { %1301 = vmatpush.msra.mxu3 %v866_v56 }
 0x2cf   :  { %v1733_v0 = vpop.eup %1732 }
 0x2d0   :  { %v1161_v6 = vmul.f32 %v1733_v0, %v2320_v57  ;;  %v1136_v7 = vpop.xlane.xlu2 %1135 }
 0x2d1   :  { %1734 = vrcp.f32 %v1136_v7 }
 0x2d2   :  { %1679 = vmatmul.msk.f32.vlgmr.msrb.gmra.mxu3 %vm871_vm1, %v1161_v6 }
 0x2d7   :  { %v1735_v1 = vpop.eup %1734 }
 0x2d8   :  { %v1162_v61 = vmul.f32 %v1735_v1, %v2324_v8  ;;  %v1139_v25 = vpop.xlane.xlu1 %1138 }
 0x2d9   :  { %1736 = vrcp.f32 %v1139_v25 }
 0x2da   :  { %1680 = vmatmul.msk.f32.vlgmr.msra.gmra.mxu0 %vm871_vm1, %v1162_v61 }
 0x2df   :  { %v1737_v58 = vpop.eup %1736 }
 0x2e0   :  { %v1163_v9 = vmul.f32 %v1737_v58, %v2328_v3  ;;  %v1148_v4 = vpop.xlane.xlu1 %1147  ;;  %v1142_v10 = vpop.xlane.xlu0 %1141 }
 0x2e1   :  { %1738 = vrcp.f32 %v1148_v4 }
 0x2e2   :  { %1681 = vmatmul.msk.f32.vlgmr.msra.gmra.mxu1 %vm871_vm1, %v1163_v9  ;;  %1740 = vrcp.f32 %v1142_v10 }
 0x2e7   :  { %v1739_v57 = vpop.eup %1738 }
 0x2e8   :  { %v1166_v59 = vmul.f32 %v1739_v57, %v2333_v21  ;;  %v1145_v11 = vpop.xlane.xlu2 %1144  ;;  %v1741_v12 = vpop.eup %1740 }
 0x2e9   :  { %1742 = vrcp.f32 %v1145_v11  ;;  %v1151_v8 = vpop.xlane.xlu0 %1150  ;;  %v1164_v13 = vmul.f32 %v1741_v12, %v2337_v24 }
 0x2ea   :  { %1684 = vmatmul.msk.f32.vlgmr.msrb.gmra.mxu0 %vm871_vm1, %v1166_v59  ;;  %1744 = vrcp.f32 %v1151_v8 }
 0x2eb   :  { %1682 = vmatmul.msk.f32.vlgmr.msrb.gmra.mxu2 %vm871_vm1, %v1164_v13 }
 0x2ef   :  { %v1743_v3 = vpop.eup %1742 }
 0x2f0   :  { %v1165_v14 = vmul.f32 %v1743_v3, %v2343_v33  ;;  %v1745_v15 = vpop.eup %1744 }
 0x2f1   :  { %v1167_v16 = vmul.f32 %v1745_v15, %v2341_v27 }
 0x2f2   :  { %1683 = vmatmul.msk.f32.vlgmr.msra.gmra.mxu3 %vm871_vm1, %v1165_v14 }
 0x2f3   :  { %1685 = vmatmul.msk.f32.vlgmr.msrb.gmra.mxu1 %vm871_vm1, %v1167_v16 }
 0x34d   :  { %v1188_v21 = vpop.f32.mrf.mxu3 }
 0x34e   :  { %v1354_v17 = vrot.slane %v1188_v21, 4 }
 0x355   :  { %v1211_v63 = vpop.f32.mrf.mxu3 }
 0x356   :  { %v1366_v26 = vrot.slane %v1211_v63, 4 }
 0x357   :  { %v1234_v52 = vpop.f32.mrf.mxu0 }
 0x358   :  { %v1352_v18 = vrot.slane %v1234_v52, 4  ;;  %v1355_v24 = vsel %vm171_vm0, %v1234_v52, %v1354_v17 }
 0x359   :  { %v1363_v23 = vperm.slane %v1355_v24, %v1959_v53 }
 0x35a   :  { %v1353_v22 = vsel %vm171_vm0, %v1352_v18, %v1188_v21 }
 0x35b   :  { %v1359_v33 = vperm.slane %v1353_v22, %v1959_v53  ;;  %v1390_v30 = vrot.slane %v1363_v23, 4 }
 0x35d   :  { %v1378_v20 = vrot.slane %v1359_v33, 4 }
 0x35f   :  { %v1257_v62 = vpop.f32.mrf.mxu1 }
 0x360   :  { %v1364_v27 = vrot.slane %v1257_v62, 4  ;;  %v1367_v29 = vsel %vm171_vm0, %v1257_v62, %v1366_v26 }
 0x361   :  { %v1375_v31 = vperm.slane %v1367_v29, %v1959_v53 }
 0x362   :  { %v1365_v19 = vsel %vm171_vm0, %v1364_v27, %v1211_v63 }
 0x363   :  { %v1371_v35 = vperm.slane %v1365_v19, %v1959_v53  ;;  %v1388_v48 = vrot.slane %v1375_v31, 4  ;;  %v1391_v36 = vsel %vm171_vm0, %v1375_v31, %v1390_v30 }
 0x364   :  { %v1399_v38 = vperm.slane %v1391_v36, %v1970_v2 }
 0x365   :  { %v1376_v34 = vrot.slane %v1371_v35, 4  ;;  %v1379_v41 = vsel %vm171_vm0, %v1371_v35, %v1378_v20  ;;  %v1389_v37 = vsel %vm171_vm0, %v1388_v48, %v1363_v23 }
 0x366   :  { %v1387_v40 = vperm.slane %v1379_v41, %v1970_v2  ;;  %v1395_v42 = vperm.slane %v1389_v37, %v1970_v2  ;;  %v1406_v43 = vrot.slane %v1399_v38, 4 }
 0x367   :  { %v1377_v45 = vsel %vm171_vm0, %v1376_v34, %v1359_v33  ;;  %v1326_v47 = vpop.f32.mrf.mxu0 }
 0x368   :  { %v1383_v39 = vperm.slane %v1377_v45, %v1970_v2  ;;  %v1402_v46 = vrot.slane %v1387_v40, 4  ;;  %v1404_v50 = vrot.slane %v1395_v42, 4  ;;  %v1407_v28 = vsel %vm171_vm0, 0.0, %v1406_v43 }
 0x369   :  { %v1475_v60 = vsel %vm171_vm0, %v1406_v43, %v1395_v42  ;;  %v1480_v51 = vrot.slane %v1407_v28, 4  ;;  %v1408_v61 = vrot.slane %v1326_v47, 4 }
 0x36a   :  { %v1400_v5 = vrot.slane %v1383_v39, 4  ;;  %v1403_v32 = vsel %vm171_vm0, 0.0, %v1402_v46  ;;  %v1405_v49 = vsel %vm171_vm0, 0.0, %v1404_v50  ;;  %v1479_v54 = vperm.slane %v1475_v60, %v1959_v53 }
 0x36b   :  { %v1469_v55 = vrot.slane %v1403_v32, 4  ;;  %v1464_v44 = vsel %vm171_vm0, %v1402_v46, %v1383_v39  ;;  %v1481_v56 = vsel %vm171_vm0, %v1480_v51, %v1405_v49 }
 0x36c   :  { %v1401_v0 = vsel %vm171_vm0, 0.0, %v1400_v5  ;;  %v1468_v6 = vperm.slane %v1464_v44, %v1959_v53  ;;  %v1485_v7 = vperm.slane %v1481_v56, %v1959_v53  ;;  %v1500_v1 = vrot.slane %v1479_v54, 4 }
 0x36d   :  { %v1470_v25 = vsel %vm171_vm0, %v1469_v55, %v1401_v0 }
 0x36e   :  { %v1474_v58 = vperm.slane %v1470_v25, %v1959_v53  ;;  %v1488_v9 = vrot.slane %v1468_v6, 4  ;;  %v1501_v4 = vsel %vm171_vm0, %v1485_v7, %v1500_v1  ;;  %v1498_v10 = vrot.slane %v1485_v7, 4  ;;  %v1280_v57 = vpop.f32.mrf.mxu2 }
 0x36f   :  { %v1509_v59 = vperm.slane %v1501_v4, %v1970_v2  ;;  %v1409_v11 = vsel %vm171_vm0, %v1408_v61, %v1280_v57  ;;  %v1410_v12 = vrot.slane %v1280_v57, 4 }
 0x370   :  { %v1489_v8 = vsel %vm171_vm0, %v1474_v58, %v1488_v9  ;;  %v1486_v13 = vrot.slane %v1474_v58, 4  ;;  %v1349_v3 = vpop.f32.mrf.mxu1  ;;  %v1499_v16 = vsel %vm171_vm0, %v1498_v10, %v1479_v54  ;;  %v1415_v18 = vperm.slane %v1409_v11, %v1959_v53 }
 0x371   :  { %v1497_v14 = vperm.slane %v1489_v8, %v1970_v2  ;;  %v1514_v15 = vrot.slane %v1509_v59, 4  ;;  %v1411_v21 = vsel %vm171_vm0, %v1326_v47, %v1410_v12  ;;  %v1505_v17 = vperm.slane %v1499_v16, %v1970_v2 }
 0x372   :  { %v1487_v52 = vsel %vm171_vm0, %v1486_v13, %v1468_v6  ;;  %v1420_v22 = vrot.slane %v1349_v3, 4  ;;  %v1419_v33 = vperm.slane %v1411_v21, %v1959_v53  ;;  %v1434_v20 = vrot.slane %v1415_v18, 4 }
 0x373   :  { %v1515_v24 = vsel %vm171_vm0, %v1514_v15, %v1497_v14  ;;  %v1516_v63 = vrot.slane %v1497_v14, 4  ;;  %v1493_v23 = vperm.slane %v1487_v52, %v1970_v2  ;;  %v1510_v26 = vrot.slane %v1505_v17, 4 }
 0x374   :  { %1582 = vrot.lane.b32.xlu1 %v1515_v24, %s1777_s4  ;;  %v1446_v38 = vrot.slane %v1419_v33, 4 }
 0x375   :  { %v1303_v62 = vpop.f32.mrf.mxu3  ;;  %v1517_v27 = vsel %vm171_vm0, %v1509_v59, %v1516_v63  ;;  %v1512_v31 = vrot.slane %v1493_v23, 4  ;;  %v2495_v19 = vsel %vm171_vm0, %v1510_v26, %v1493_v23  ;;  %v1607_v23 = vld [vmem:[%s2564_s5 + $0x18] sm:$0xff]  ;;  %v1605_v26 = vld [vmem:[%s2564_s5 + $0x8] sm:$0xff] }
 0x376   :  { %v1421_v29 = vsel %vm171_vm0, %v1420_v22, %v1303_v62  ;;  %v1422_v30 = vrot.slane %v1303_v62, 4  ;;  %1590 = vrot.lane.b32.xlu0 %v1517_v27, %s1778_s25  ;;  %1631 = vmatpush.msra.mxu2 %v1607_v23 }
 0x377   :  { %v1427_v35 = vperm.slane %v1421_v29, %v1959_v53  ;;  %v1513_v36 = vsel %vm171_vm0, %v1505_v17, %v1512_v31 }
 0x378   :  { %v1423_v48 = vsel %vm171_vm0, %v1349_v3, %v1422_v30  ;;  %1574 = vrot.lane.b32.xlu2 %v1513_v36, %s1779_s26 }
 0x379   :  { %v1431_v34 = vperm.slane %v1423_v48, %v1959_v53  ;;  %v1432_v41 = vrot.slane %v1427_v35, 4  ;;  %v1435_v37 = vsel %vm171_vm0, %v1427_v35, %v1434_v20 }
 0x37a   :  { %v1443_v40 = vperm.slane %v1435_v37, %v1970_v2  ;;  %v1713_v37 = vld [vmem:[%s2565_s6] ss:$0 sm:$0xff] }
 0x37b   :  { %v1433_v42 = vsel %vm171_vm0, %v1432_v41, %v1415_v18  ;;  %v1444_v43 = vrot.slane %v1431_v34, 4  ;;  %v1447_v45 = vsel %vm171_vm0, %v1431_v34, %v1446_v38 }
 0x37c   :  { %v1439_v39 = vperm.slane %v1433_v42, %v1970_v2  ;;  %v1455_v46 = vperm.slane %v1447_v45, %v1970_v2  ;;  %v1458_v50 = vrot.slane %v1443_v40, 4 }
 0x37d   :  { %v1445_v28 = vsel %vm171_vm0, %v1444_v43, %v1419_v33  ;;  %v1604_v33 = vld [vmem:[%s2564_s5] sm:$0xff] }
 0x37e   :  { %v1451_v60 = vperm.slane %v1445_v28, %v1970_v2  ;;  %v1456_v51 = vrot.slane %v1439_v39, 4  ;;  %v1459_v5 = vsel %vm171_vm0, 0.0, %v1458_v50  ;;  %v1462_v32 = vrot.slane %v1455_v46, 4 }
 0x37f   :  { %v1518_v49 = vsel %vm171_vm0, %v1458_v50, %v1439_v39  ;;  %v1523_v54 = vrot.slane %v1459_v5, 4 }
 0x380   :  { %v1457_v47 = vsel %vm171_vm0, 0.0, %v1456_v51  ;;  %v1460_v55 = vrot.slane %v1451_v60, 4  ;;  %v1463_v44 = vsel %vm171_vm0, 0.0, %v1462_v32  ;;  %v1522_v56 = vperm.slane %v1518_v49, %v1959_v53 }
 0x381   :  { %v1534_v0 = vrot.slane %v1463_v44, 4  ;;  %v1524_v6 = vsel %vm171_vm0, %v1523_v54, %v1457_v47  ;;  %v1529_v7 = vsel %vm171_vm0, %v1462_v32, %v1451_v60 }
 0x382   :  { %v1461_v1 = vsel %vm171_vm0, 0.0, %v1460_v55  ;;  %v1528_v61 = vperm.slane %v1524_v6, %v1959_v53  ;;  %v1533_v25 = vperm.slane %v1529_v7, %v1959_v53  ;;  %v1542_v58 = vrot.slane %v1522_v56, 4 }
 0x383   :  { %v1535_v9 = vsel %vm171_vm0, %v1534_v0, %v1461_v1 }
 0x384   :  { %v1539_v4 = vperm.slane %v1535_v9, %v1959_v53  ;;  %v1543_v10 = vsel %vm171_vm0, %v1528_v61, %v1542_v58  ;;  %v1554_v57 = vrot.slane %v1533_v25, 4  ;;  %v1540_v59 = vrot.slane %v1528_v61, 4 }
 0x385   :  { %v1551_v11 = vperm.slane %v1543_v10, %v1970_v2 }
 0x386   :  { %v1555_v12 = vsel %vm171_vm0, %v1539_v4, %v1554_v57  ;;  %v1541_v8 = vsel %vm171_vm0, %v1540_v59, %v1522_v56  ;;  %v1552_v13 = vrot.slane %v1539_v4, 4 }
 0x387   :  { %v1563_v3 = vperm.slane %v1555_v12, %v1970_v2  ;;  %v1570_v14 = vrot.slane %v1551_v11, 4  ;;  %v1547_v15 = vperm.slane %v1541_v8, %v1970_v2 }
 0x388   :  { %v1553_v16 = vsel %vm171_vm0, %v1552_v13, %v1533_v25 }
 0x389   :  { %v1571_v53 = vsel %vm171_vm0, %v1563_v3, %v1570_v14  ;;  %v1568_v21 = vrot.slane %v1563_v3, 4  ;;  %v1559_v52 = vperm.slane %v1553_v16, %v1970_v2  ;;  %v1566_v17 = vrot.slane %v1547_v15, 4  ;;  %v1606_v2 = vld [vmem:[%s2564_s5 + $0x10] sm:$0xff] }
 0x38a   :  { %1592 = vrot.lane.b32.xlu1 %v1571_v53, %s1778_s25  ;;  %1632 = vmatpush.msra.mxu2 %v1606_v2 }
 0x38b   :  { %v1569_v18 = vsel %vm171_vm0, %v1568_v21, %v1551_v11  ;;  %v1564_v24 = vrot.slane %v1559_v52, 4  ;;  %v1567_v63 = vsel %vm171_vm0, %v1559_v52, %v1566_v17 }
 0x38c   :  { %1584 = vrot.lane.b32.xlu0 %v1569_v18, %s1777_s4  ;;  %1576 = vrot.lane.b32.xlu2 %v1567_v63, %s1779_s26 }
 0x38d   :  { %v1565_v22 = vsel %vm171_vm0, %v1564_v24, %v1547_v15  ;;  %1633 = vmatpush.msra.mxu2 %v1605_v26 }
 0x38f   :  { %1634 = vmatpush.msra.mxu2 %v1604_v33 }
 0x3d2   :  { %v1575_v62 = vpop.permute.xlu2 %1574 }
 0x3d3   :  { %v1596_v27 = vsel %vm871_vm1, %v2495_v19, %v1575_v62 }
 0x3e6   :  { %v1583_v29 = vpop.permute.xlu1 %1582  ;;  %v1577_v35 = vpop.permute.xlu2 %1576 }
 0x3e7   :  { %v1599_v30 = vsel %vm1598_vm2, %v1596_v27, %v1583_v29  ;;  %v1597_v48 = vsel %vm871_vm1, %v1565_v22, %v1577_v35 }
 0x3e8   :  { %v1591_v31 = vpop.permute.xlu0 %1590 }
 0x3e9   :  { %v1602_v20 = vsel %vm1601_vm3, %v1599_v30, %v1591_v31 }
 0x3ea   :  { %1686 = vmatmul.msk.f32.vlgmr.msra.gmra.mxu2 %vm1612_vm4, %v1602_v20 }
 0x3fc   :  { %v1593_v38 = vpop.permute.xlu1 %1592 }
 0x3fe   :  { %v1585_v36 = vpop.permute.xlu0 %1584 }
 0x3ff   :  { %v1600_v34 = vsel %vm1598_vm2, %v1597_v48, %v1585_v36 }
 0x400   :  { %v1603_v41 = vsel %vm1601_vm3, %v1600_v34, %v1593_v38 }
 0x401   :  { %1687 = vmatmul.msk.f32.gmra.mxu2 %vm1612_vm4, %v1603_v41 }
 0x46d   :  { %v1636_v19 = vpop.f32.mrf.mxu2 }
 0x46e   :  { %v1637_v40 = vadd.f32 %v1713_v37, %v1636_v19 }
 0x470   :  { %1642 = vst [vmem:[#allocation2] sm:$0xff] %v1637_v40 }
 0x484   :  { %v1639_v42 = vpop.f32.mrf.mxu2 }
 0x485   :  { %v1640_v43 = vadd.f32 %v1713_v37, %v1639_v42 }
 0x487   :  { %1643 = vst [vmem:[#allocation2 + $0x8] sm:$0xff] %v1640_v43 }
 0x488   :  { %1656 = dma.vmem_to_hbm [thread:$0]  %s1649_s2, 256, %s1651_s21, [#allocation3], %s1781_s23, %s1781_s23, %s1779_s26  }
 0x489   :  { %1770 = dma.done.wait [#allocation3], 256  }
 0x48a   :  { %1771 = vsyncadd [#allocation3], 4294967040 }
 0x48b   :  { %1661 = vsyncpa [#allocation3], 1 }

// kernel: tpu_custom_call.1
= control target key start
LH: loop header
LB: loop body
LE: loop exit
PB: predicated region body
PF: predicated region fallthrough
CT: control target
= control target key end

     0   :  { %s2559_s0 = inlined_call_operand.vmem [shape: f32[16,128], index: 0, kind: input, shape index: {}]   ;;  %s2560_s1 = inlined_call_operand.vmem [shape: f32[16,128], index: 1, kind: input, shape index: {}]   ;;  %s2561_s2 = inlined_call_operand.vmem [shape: f32[128,32], index: 2, kind: input, shape index: {}]   ;;  %s2562_s3 = inlined_call_operand.vmem [shape: f32[128,32], index: 3, kind: input, shape index: {}]   ;;  %s2563_s4 = inlined_call_operand.vmem [shape: f32[128,32], index: 4, kind: input, shape index: {}]   ;;  %s2564_s5 = inlined_call_operand.vmem [shape: f32[32,128], index: 5, kind: input, shape index: {}]   ;;  %s2565_s6 = inlined_call_operand.vmem [shape: f32[1,128], index: 6, kind: input, shape index: {}]   ;;  %s2566_s7 = inlined_call_operand.hbm [shape: f32[16,128], index: 7, kind: output, shape index: {}]  }
   0x1   :  { %v46_v0 = vld [vmem:[%s2561_s2 + $0x78] sm:$0xff]  ;;  %v45_v2 = vld [vmem:[%s2561_s2 + $0x70] sm:$0xff]  ;;  %v44_v4 = vld [vmem:[%s2561_s2 + $0x68] sm:$0xff] }
   0x2   :  { %v87_v1 = vld [vmem:[%s2562_s3 + $0x78] sm:$0xff]  ;;  %47 = vmatpush.msra.mxu0 %v46_v0  ;;  %v86_v3 = vld [vmem:[%s2562_s3 + $0x70] sm:$0xff]  ;;  %v85_v5 = vld [vmem:[%s2562_s3 + $0x68] sm:$0xff] }
   0x3   :  { %88 = vmatpush.msra.mxu1 %v87_v1  ;;  %v43_v6 = vld [vmem:[%s2561_s2 + $0x60] sm:$0xff]  ;;  %v42_v8 = vld [vmem:[%s2561_s2 + $0x58] sm:$0xff]  ;;  %v41_v10 = vld [vmem:[%s2561_s2 + $0x50] sm:$0xff] }
   0x4   :  { %48 = vmatpush.msra.mxu0 %v45_v2  ;;  %v84_v7 = vld [vmem:[%s2562_s3 + $0x60] sm:$0xff]  ;;  %v83_v9 = vld [vmem:[%s2562_s3 + $0x58] sm:$0xff]  ;;  %v82_v11 = vld [vmem:[%s2562_s3 + $0x50] sm:$0xff] }
   0x5   :  { %89 = vmatpush.msra.mxu1 %v86_v3  ;;  %v40_v12 = vld [vmem:[%s2561_s2 + $0x48] sm:$0xff]  ;;  %v39_v14 = vld [vmem:[%s2561_s2 + $0x40] sm:$0xff] }
   0x6   :  { %49 = vmatpush.msra.mxu0 %v44_v4  ;;  %v81_v13 = vld [vmem:[%s2562_s3 + $0x48] sm:$0xff]  ;;  %v80_v15 = vld [vmem:[%s2562_s3 + $0x40] sm:$0xff] }
   0x7   :  { %90 = vmatpush.msra.mxu1 %v85_v5 }
   0x8   :  { %50 = vmatpush.msra.mxu0 %v43_v6 }
   0x9   :  { %91 = vmatpush.msra.mxu1 %v84_v7 }
   0xa   :  { %51 = vmatpush.msra.mxu0 %v42_v8 }
   0xb   :  { %92 = vmatpush.msra.mxu1 %v83_v9 }
   0xc   :  { %52 = vmatpush.msra.mxu0 %v41_v10 }
   0xd   :  { %93 = vmatpush.msra.mxu1 %v82_v11 }
   0xe   :  { %12 = vsyncpa [#allocation3], 0  ;;  %53 = vmatpush.msra.mxu0 %v40_v12  ;;  %v38_v16 = vld [vmem:[%s2561_s2 + $0x38] sm:$0xff]  ;;  %v37_v18 = vld [vmem:[%s2561_s2 + $0x30] sm:$0xff]  ;;  %s1772_s25 = smov 104   ;;  %s1773_s26 = smov 120  }
   0xf   :  { %94 = vmatpush.msra.mxu1 %v81_v13  ;;  %v79_v17 = vld [vmem:[%s2562_s3 + $0x38] sm:$0xff]  ;;  %v78_v19 = vld [vmem:[%s2562_s3 + $0x30] sm:$0xff]  ;;  %v36_v20 = vld [vmem:[%s2561_s2 + $0x28] sm:$0xff]  ;;  %s1774_s27 = smov 112   ;;  %v1775_v44 = vmov 1983009808  }
  0x10   :  { %54 = vmatpush.msra.mxu0 %v39_v14  ;;  %v77_v21 = vld [vmem:[%s2562_s3 + $0x28] sm:$0xff]  ;;  %v35_v22 = vld [vmem:[%s2561_s2 + $0x20] sm:$0xff]  ;;  %v34_v24 = vld [vmem:[%s2561_s2 + $0x18] sm:$0xff]  ;;  %v176_v45 = vunpack.c.l.s4 %v1775_v44  ;;  %vm171_vm0 = vcmask 1047556   ;;  %v1776_v56 = vmov 1934713408  }
  0x11   :  { %95 = vmatpush.msra.mxu1 %v80_v15  ;;  %v76_v23 = vld [vmem:[%s2562_s3 + $0x20] sm:$0xff]  ;;  %v75_v25 = vld [vmem:[%s2562_s3 + $0x18] sm:$0xff]  ;;  %v33_v26 = vld [vmem:[%s2561_s2 + $0x10] sm:$0xff]  ;;  %v200_v57 = vunpack.c.l.s4 %v1776_v56  ;;  %vm871_vm1 = vcmask 64512   ;;  %vm1598_vm2 = vcmask 130048   ;;  %vm1601_vm3 = vcmask 195584  }
  0x12   :  { %55 = vmatpush.msra.mxu0 %v38_v16  ;;  %v74_v27 = vld [vmem:[%s2562_s3 + $0x10] sm:$0xff]  ;;  %v32_v28 = vld [vmem:[%s2561_s2 + $0x8] sm:$0xff]  ;;  %v31_v30 = vld [vmem:[%s2561_s2] sm:$0xff]  ;;  %v1959_v53 = vunpack.c.0.s8 %v176_v45  ;;  %vm1612_vm4 = vcmask 261120   ;;  %s1650_s21 = sshll.u32 %s2566_s7, 4  ;;  %s1780_s22 = smov [#allocation2]   ;;  %s1651_s21 = int_to_ptr.hbm [resolvable:$true] %s1650_s21 }
  0x13   :  { %96 = vmatpush.msra.mxu1 %v79_v17  ;;  %v73_v29 = vld [vmem:[%s2562_s3 + $0x8] sm:$0xff]  ;;  %v72_v31 = vld [vmem:[%s2562_s3] sm:$0xff]  ;;  %v1970_v2 = vunpack.c.0.s8 %v200_v57  ;;  %s1648_s2 = sshll.u32 %s1780_s22, 4  ;;  %s1781_s23 = smov 128   ;;  %s1649_s2 = int_to_ptr.vmem [resolvable:$true] %s1648_s2 }
  0x14   :  { %56 = vmatpush.msra.mxu0 %v37_v18  ;;  %v27_v32 = vld [vmem:[%s2559_s0] sm:$0xff]  ;;  %v1930_v34 = vld [vmem:[%s2560_s1 + $0x8] sm:$0xff] }
  0x15   :  { %97 = vmatpush.msra.mxu1 %v78_v19  ;;  %v1924_v33 = vld [vmem:[%s2560_s1] sm:$0xff]  ;;  %v28_v35 = vld [vmem:[%s2559_s0 + $0x8] sm:$0xff] }
  0x16   :  { %57 = vmatpush.msra.mxu0 %v36_v20 }
  0x17   :  { %98 = vmatpush.msra.mxu1 %v77_v21 }
  0x18   :  { %58 = vmatpush.msra.mxu0 %v35_v22 }
  0x19   :  { %99 = vmatpush.msra.mxu1 %v76_v23 }
  0x1a   :  { %59 = vmatpush.msra.mxu0 %v34_v24 }
  0x1b   :  { %100 = vmatpush.msra.mxu1 %v75_v25 }
  0x1c   :  { %60 = vmatpush.msra.mxu0 %v33_v26 }
  0x1d   :  { %101 = vmatpush.msra.mxu1 %v74_v27 }
  0x1e   :  { %61 = vmatpush.msra.mxu0 %v32_v28 }
  0x1f   :  { %102 = vmatpush.msra.mxu1 %v73_v29 }
  0x20   :  { %62 = vmatpush.msra.mxu0 %v31_v30 }
  0x21   :  { %103 = vmatpush.msra.mxu1 %v72_v31  ;;  %63 = vmatmul.f32.vlgmr.msra.gmra.mxu0 %v27_v32 }
  0x22   :  { %104 = vmatmul.f32.vlgmr.msra.gmra.mxu1 %v1924_v33 }
  0x29   :  { %66 = vmatmul.f32.gmra.mxu0 %v28_v35 }
  0x2a   :  { %107 = vmatmul.f32.gmra.mxu1 %v1930_v34 }
  0x9e   :  { %v64_v36 = vpop.f32.mrf.mxu0 }
  0x9f   :  { %v105_v37 = vpop.f32.mrf.mxu1  ;;  %v70_v38 = vmul.f32 0.35355338, %v64_v36 }
  0xa0   :  { %405 = vrot.lane.b32.xlu1 %v105_v37, %s1772_s25  ;;  %393 = vrot.lane.b32.xlu0 %v105_v37, %s1773_s26  ;;  %v413_v0 = vrot.slane %v105_v37, 4 }
  0xa1   :  { %158 = vrot.lane.b32.xlu2 %v70_v38, %s1774_s27  ;;  %v173_v51 = vrot.slane %v70_v38, 4 }
  0xa6   :  { %v67_v40 = vpop.f32.mrf.mxu0 }
  0xa7   :  { %v1942_v39 = vpop.f32.mrf.mxu1  ;;  %v1950_v41 = vmul.f32 0.35355338, %v67_v40 }
  0xa8   :  { %399 = vrot.lane.b32.xlu0 %v105_v37, %s1774_s27  ;;  %152 = vrot.lane.b32.xlu1 %v70_v38, %s1773_s26 }
  0xa9   :  { %164 = vrot.lane.b32.xlu2 %v70_v38, %s1772_s25  ;;  %v229_v57 = vrot.slane %v1950_v41, 4 }
  0xb0   :  { %395 = vrot.lane.b32.xlu0 %v1942_v39, %s1773_s26  ;;  %401 = vrot.lane.b32.xlu1 %v1942_v39, %s1774_s27 }
  0xb1   :  { %407 = vrot.lane.b32.xlu2 %v1942_v39, %s1772_s25 }
  0xb8   :  { %160 = vrot.lane.b32.xlu1 %v1950_v41, %s1774_s27  ;;  %154 = vrot.lane.b32.xlu0 %v1950_v41, %s1773_s26 }
  0xb9   :  { %166 = vrot.lane.b32.xlu2 %v1950_v41, %s1772_s25 }
  0xfb   :  { %v159_v42 = vpop.permute.xlu2 %158 }
  0xfc   :  { %v170_v46 = vrot.slane %v159_v42, 4  ;;  %v174_v58 = vsel %vm171_vm0, %v159_v42, %v173_v51 }
  0xfd   :  { %v182_v1 = vperm.slane %v174_v58, %v1959_v53 }
  0xfe   :  { %v172_v54 = vsel %vm171_vm0, %v170_v46, %v70_v38 }
  0xff   :  { %v178_v60 = vperm.slane %v172_v54, %v1959_v53  ;;  %v209_v20 = vrot.slane %v182_v1, 4 }
 0x101   :  { %v197_v12 = vrot.slane %v178_v60, 4 }
 0x103   :  { %v165_v43 = vpop.permute.xlu2 %164 }
 0x104   :  { %v183_v61 = vrot.slane %v165_v43, 4 }
 0x10b   :  { %v1967_v63 = vpop.permute.xlu2 %407 }
 0x10c   :  { %v479_v45 = vrot.slane %v1967_v63, 4 }
 0x112   :  { %v406_v47 = vpop.permute.xlu1 %405  ;;  %v394_v48 = vpop.permute.xlu0 %393 }
 0x113   :  { %v423_v49 = vrot.slane %v406_v47, 4  ;;  %v425_v50 = vrot.slane %v394_v48, 4  ;;  %v167_v44 = vpop.permute.xlu2 %166 }
 0x114   :  { %v239_v56 = vrot.slane %v167_v44, 4 }
 0x115   :  { %v426_v52 = vsel %vm171_vm0, %v406_v47, %v425_v50  ;;  %v424_v55 = vsel %vm171_vm0, %v423_v49, %v394_v48 }
 0x116   :  { %v434_v59 = vperm.slane %v426_v52, %v1959_v53  ;;  %v430_v62 = vperm.slane %v424_v55, %v1959_v53  ;;  %v469_v55 = vrot.slane %v1942_v39, 4 }
 0x118   :  { %v447_v9 = vrot.slane %v434_v59, 4  ;;  %v435_v13 = vrot.slane %v430_v62, 4 }
 0x11a   :  { %v400_v3 = vpop.permute.xlu0 %399  ;;  %v153_v4 = vpop.permute.xlu1 %152 }
 0x11b   :  { %v411_v5 = vrot.slane %v400_v3, 4  ;;  %v414_v6 = vsel %vm171_vm0, %v400_v3, %v413_v0  ;;  %v184_v7 = vsel %vm171_vm0, %v183_v61, %v153_v4  ;;  %v185_v8 = vrot.slane %v153_v4, 4 }
 0x11c   :  { %v422_v10 = vperm.slane %v414_v6, %v1959_v53  ;;  %v190_v11 = vperm.slane %v184_v7, %v1959_v53 }
 0x11d   :  { %v412_v14 = vsel %vm171_vm0, %v411_v5, %v105_v37  ;;  %v186_v15 = vsel %vm171_vm0, %v165_v43, %v185_v8 }
 0x11e   :  { %v418_v16 = vperm.slane %v412_v14, %v1959_v53  ;;  %v448_v17 = vsel %vm171_vm0, %v447_v9, %v422_v10  ;;  %v449_v18 = vrot.slane %v422_v10, 4  ;;  %v194_v19 = vperm.slane %v186_v15, %v1959_v53 }
 0x11f   :  { %v454_v21 = vperm.slane %v448_v17, %v1970_v2  ;;  %v195_v22 = vrot.slane %v190_v11, 4  ;;  %v198_v23 = vsel %vm171_vm0, %v190_v11, %v197_v12 }
 0x120   :  { %v436_v24 = vsel %vm171_vm0, %v435_v13, %v418_v16  ;;  %v437_v25 = vrot.slane %v418_v16, 4  ;;  %v450_v26 = vsel %vm171_vm0, %v434_v59, %v449_v18  ;;  %v206_v27 = vperm.slane %v198_v23, %v1970_v2 }
 0x121   :  { %v1987_v28 = vperm.slane %v436_v24, %v1970_v2  ;;  %v458_v29 = vperm.slane %v450_v26, %v1970_v2  ;;  %v196_v30 = vsel %vm171_vm0, %v195_v22, %v178_v60  ;;  %v207_v35 = vrot.slane %v194_v19, 4 }
 0x122   :  { %v438_v31 = vsel %vm171_vm0, %v430_v62, %v437_v25  ;;  %v1993_v32 = vperm.slane %v196_v30, %v1970_v2  ;;  %v210_v36 = vsel %vm171_vm0, %v194_v19, %v209_v20  ;;  %v396_v37 = vpop.permute.xlu0 %395  ;;  %v402_v38 = vpop.permute.xlu1 %401  ;;  %v463_v42 = vrot.slane %v454_v21, 4 }
 0x123   :  { %v446_v40 = vperm.slane %v438_v31, %v1970_v2  ;;  %v465_v43 = vrot.slane %v458_v29, 4  ;;  %v208_v46 = vsel %vm171_vm0, %v207_v35, %v182_v1  ;;  %v2000_v48 = vrot.slane %v206_v27, 4 }
 0x124   :  { %v219_v47 = vrot.slane %v1993_v32, 4  ;;  %v2004_v51 = vperm.slane %v208_v46, %v1970_v2  ;;  %v218_v52 = vperm.slane %v210_v36, %v1970_v2  ;;  %v459_v54 = vrot.slane %v1987_v28, 4 }
 0x125   :  { %v461_v49 = vrot.slane %v446_v40, 4  ;;  %v466_v50 = vsel %vm171_vm0, 0.0, %v465_v43  ;;  %v464_v59 = vsel %vm171_vm0, 0.0, %v463_v42  ;;  %v2014_v60 = vsel %vm171_vm0, 0.0, %v2000_v48 }
 0x126   :  { %v480_v61 = vsel %vm171_vm0, %v479_v45, %v396_v37  ;;  %v2018_v62 = vsel %vm171_vm0, %v465_v43, %v454_v21  ;;  %v539_v0 = vrot.slane %v466_v50, 4  ;;  %v2021_v1 = vsel %vm171_vm0, 0.0, %v219_v47 }
 0x127   :  { %v462_v58 = vsel %vm171_vm0, 0.0, %v461_v49  ;;  %v481_v3 = vrot.slane %v396_v37, 4  ;;  %v223_v4 = vrot.slane %v2004_v51, 4  ;;  %v2024_v5 = vrot.slane %v218_v52, 4 }
 0x128   :  { %v486_v6 = vperm.slane %v480_v61, %v1959_v53  ;;  %v467_v7 = vrot.slane %v402_v38, 4  ;;  %v528_v8 = vrot.slane %v462_v58, 4  ;;  %v288_v9 = vrot.slane %v2014_v60, 4 }
 0x129   :  { %v482_v10 = vsel %vm171_vm0, %v1967_v63, %v481_v3  ;;  %v470_v11 = vsel %vm171_vm0, %v402_v38, %v469_v55  ;;  %v460_v27 = vsel %vm171_vm0, 0.0, %v459_v54  ;;  %v523_v35 = vsel %vm171_vm0, %v461_v49, %v1987_v28 }
 0x12a   :  { %v161_v12 = vpop.permute.xlu1 %160  ;;  %v155_v13 = vpop.permute.xlu0 %154  ;;  %v490_v14 = vperm.slane %v482_v10, %v1959_v53  ;;  %v491_v15 = vrot.slane %v486_v6, 4  ;;  %v468_v16 = vsel %vm171_vm0, %v467_v7, %v1942_v39  ;;  %v478_v17 = vperm.slane %v470_v11, %v1959_v53 }
 0x12b   :  { %v474_v18 = vperm.slane %v468_v16, %v1959_v53  ;;  %v227_v19 = vrot.slane %v161_v12, 4  ;;  %v230_v20 = vsel %vm171_vm0, %v161_v12, %v229_v57  ;;  %v240_v21 = vsel %vm171_vm0, %v239_v56, %v155_v13 }
 0x12c   :  { %v503_v63 = vrot.slane %v490_v14, 4  ;;  %v505_v22 = vrot.slane %v478_v17, 4  ;;  %v238_v23 = vperm.slane %v230_v20, %v1959_v53  ;;  %v241_v24 = vrot.slane %v155_v13, 4 }
 0x12d   :  { %v493_v25 = vrot.slane %v474_v18, 4  ;;  %v228_v26 = vsel %vm171_vm0, %v227_v19, %v1950_v41  ;;  %v246_v39 = vperm.slane %v240_v21, %v1959_v53  ;;  %v492_v36 = vsel %vm171_vm0, %v491_v15, %v474_v18 }
 0x12e   :  { %v504_v29 = vsel %vm171_vm0, %v503_v63, %v478_v17  ;;  %v506_v30 = vsel %vm171_vm0, %v490_v14, %v505_v22  ;;  %v234_v31 = vperm.slane %v228_v26, %v1959_v53  ;;  %v265_v43 = vrot.slane %v238_v23, 4 }
 0x12f   :  { %v494_v37 = vsel %vm171_vm0, %v486_v6, %v493_v25  ;;  %v510_v38 = vperm.slane %v504_v29, %v1970_v2  ;;  %v514_v41 = vperm.slane %v506_v30, %v1970_v2  ;;  %v242_v45 = vsel %vm171_vm0, %v167_v44, %v241_v24  ;;  %v125_v29 = vld [vmem:[%s2563_s4 + $0x70] sm:$0xff] }
 0x130   :  { %v502_v40 = vperm.slane %v494_v37, %v1970_v2  ;;  %v253_v42 = vrot.slane %v234_v31, 4  ;;  %v250_v50 = vperm.slane %v242_v45, %v1959_v53  ;;  %v251_v52 = vrot.slane %v246_v39, 4 }
 0x131   :  { %v519_v46 = vrot.slane %v510_v38, 4  ;;  %v521_v47 = vrot.slane %v514_v41, 4  ;;  %v540_v28 = vsel %vm171_vm0, %v539_v0, %v464_v59  ;;  %v226_v49 = vsel %vm171_vm0, 0.0, %v2024_v5 }
 0x132   :  { %v254_v54 = vsel %vm171_vm0, %v246_v39, %v253_v42  ;;  %v529_v55 = vsel %vm171_vm0, %v528_v8, %v460_v27  ;;  %v224_v56 = vsel %vm171_vm0, 0.0, %v223_v4  ;;  %v2062_v57 = vperm.slane %v492_v36, %v1970_v2  ;;  %v124_v42 = vld [vmem:[%s2563_s4 + $0x68] sm:$0xff] }
 0x133   :  { %v522_v44 = vsel %vm171_vm0, 0.0, %v521_v47  ;;  %v252_v58 = vsel %vm171_vm0, %v251_v52, %v234_v31  ;;  %v2066_v61 = vrot.slane %v502_v40, 4  ;;  %v520_v59 = vsel %vm171_vm0, 0.0, %v519_v46 }
 0x134   :  { %v258_v0 = vperm.slane %v252_v58, %v1970_v2  ;;  %v527_v3 = vperm.slane %v523_v35, %v1959_v53  ;;  %v262_v6 = vperm.slane %v254_v54, %v1970_v2  ;;  %v263_v7 = vrot.slane %v250_v50, 4 }
 0x135   :  { %v266_v4 = vsel %vm171_vm0, %v250_v50, %v265_v43  ;;  %v533_v8 = vperm.slane %v529_v55, %v1959_v53  ;;  %v588_v10 = vsel %vm171_vm0, %v521_v47, %v510_v38  ;;  %v593_v11 = vrot.slane %v522_v44, 4 }
 0x136   :  { %v274_v12 = vperm.slane %v266_v4, %v1970_v2  ;;  %v275_v13 = vrot.slane %v258_v0, 4  ;;  %v264_v14 = vsel %vm171_vm0, %v263_v7, %v238_v23  ;;  %v277_v15 = vrot.slane %v262_v6, 4  ;;  %v122_v7 = vld [vmem:[%s2563_s4 + $0x58] sm:$0xff] }
 0x137   :  { %v544_v16 = vperm.slane %v540_v28, %v1959_v53  ;;  %v545_v17 = vrot.slane %v533_v8, 4  ;;  %v299_v18 = vrot.slane %v226_v49, 4  ;;  %v2079_v19 = vperm.slane %v264_v14, %v1970_v2 }
 0x138   :  { %v2081_v20 = vrot.slane %v274_v12, 4  ;;  %v538_v21 = vperm.slane %v2018_v62, %v1959_v53  ;;  %v515_v63 = vrot.slane %v2062_v57, 4  ;;  %v518_v22 = vsel %vm171_vm0, 0.0, %v2066_v61  ;;  %v126_v62 = vld [vmem:[%s2563_s4 + $0x78] sm:$0xff] }
 0x139   :  { %v546_v23 = vsel %vm171_vm0, %v545_v17, %v527_v3  ;;  %v557_v24 = vrot.slane %v544_v16, 4  ;;  %v2090_v25 = vperm.slane %v588_v10, %v1959_v53  ;;  %v594_v26 = vsel %vm171_vm0, %v593_v11, %v520_v59  ;;  %127 = vmatpush.msra.mxu2 %v126_v62 }
 0x13a   :  { %v2094_v39 = vsel %vm171_vm0, 0.0, %v275_v13  ;;  %v547_v27 = vrot.slane %v527_v3, 4  ;;  %v2103_v30 = vsel %vm171_vm0, 0.0, %v277_v15  ;;  %v337_v31 = vsel %vm171_vm0, %v277_v15, %v258_v0  ;;  %v120_v15 = vld [vmem:[%s2563_s4 + $0x48] sm:$0xff] }
 0x13b   :  { %v552_v35 = vperm.slane %v546_v23, %v1970_v2  ;;  %v558_v36 = vsel %vm171_vm0, %v557_v24, %v538_v21  ;;  %v279_v37 = vrot.slane %v2079_v19, 4  ;;  %v2111_v38 = vsel %vm171_vm0, 0.0, %v2081_v20  ;;  %128 = vmatpush.msra.mxu2 %v125_v29 }
 0x13c   :  { %v559_v41 = vrot.slane %v538_v21, 4  ;;  %v564_v40 = vperm.slane %v558_v36, %v1970_v2  ;;  %v283_v45 = vsel %vm171_vm0, %v2000_v48, %v1993_v32  ;;  %v289_v46 = vsel %vm171_vm0, %v288_v9, %v2021_v1  ;;  %v123_v32 = vld [vmem:[%s2563_s4 + $0x60] sm:$0xff] }
 0x13d   :  { %v571_v43 = vrot.slane %v552_v35, 4  ;;  %v294_v47 = vsel %vm171_vm0, %v2024_v5, %v2004_v51  ;;  %v2128_v52 = vperm.slane %v289_v46, %v1959_v53  ;;  %v300_v28 = vsel %vm171_vm0, %v299_v18, %v224_v56  ;;  %129 = vmatpush.msra.mxu2 %v124_v42 }
 0x13e   :  { %v569_v50 = vrot.slane %v564_v40, 4  ;;  %v2135_v48 = vperm.slane %v337_v31, %v1959_v53  ;;  %v2139_v1 = vperm.slane %v300_v28, %v1959_v53  ;;  %v548_v51 = vsel %vm171_vm0, %v533_v8, %v547_v27 }
 0x13f   :  { %v572_v60 = vsel %vm171_vm0, %v564_v40, %v571_v43  ;;  %v2144_v9 = vperm.slane %v283_v45, %v1959_v53  ;;  %v2147_v49 = vperm.slane %v294_v47, %v1959_v53  ;;  %v305_v54 = vrot.slane %v2128_v52, 4  ;;  %130 = vmatpush.msra.mxu2 %v123_v32  ;;  %v118_v40 = vld [vmem:[%s2563_s4 + $0x38] sm:$0xff]  ;;  %v117_v47 = vld [vmem:[%s2563_s4 + $0x30] sm:$0xff] }
 0x140   :  { %v570_v5 = vsel %vm171_vm0, %v569_v50, %v552_v35  ;;  %v317_v55 = vrot.slane %v2139_v1, 4  ;;  %v2153_v56 = vperm.slane %v548_v51, %v1970_v2  ;;  %v560_v44 = vsel %vm171_vm0, %v544_v16, %v559_v41 }
 0x141   :  { %1662 = vmatpush.xpose.msk.msra.mxu3 %vm871_vm1, %v570_v5  ;;  %v577_v58 = vsel %vm171_vm0, %v2066_v61, %v2062_v57  ;;  %v2161_v59 = vperm.slane %v560_v44, %v1970_v2  ;;  %v516_v0 = vsel %vm171_vm0, 0.0, %v515_v63  ;;  %v582_v6 = vrot.slane %v518_v22, 4  ;;  %v121_v57 = vld [vmem:[%s2563_s4 + $0x50] sm:$0xff]  ;;  %131 = vmatpush.msra.mxu2 %v122_v7 }
 0x142   :  { %v2165_v3 = vperm.slane %v577_v58, %v1959_v53  ;;  %v306_v61 = vsel %vm171_vm0, %v305_v54, %v2144_v9  ;;  %v318_v4 = vsel %vm171_vm0, %v317_v55, %v2147_v49  ;;  %v598_v8 = vperm.slane %v594_v26, %v1959_v53  ;;  %v119_v26 = vld [vmem:[%s2563_s4 + $0x40] sm:$0xff]  ;;  %v116_v54 = vld [vmem:[%s2563_s4 + $0x28] sm:$0xff] }
 0x143   :  { %v613_v10 = vrot.slane %v2090_v25, 4  ;;  %v324_v11 = vperm.slane %v318_v4, %v1970_v2  ;;  %v573_v12 = vrot.slane %v2161_v59, 4  ;;  %v583_v13 = vsel %vm171_vm0, %v582_v6, %v516_v0  ;;  %132 = vmatpush.msra.mxu2 %v121_v57 }
 0x144   :  { %v601_v14 = vrot.slane %v2165_v3, 4  ;;  %v342_v16 = vrot.slane %v2103_v30, 4  ;;  %v353_v17 = vrot.slane %v2111_v38, 4  ;;  %v587_v18 = vperm.slane %v583_v13, %v1959_v53 }
 0x145   :  { %1664 = vmatpush.xpose.msk.msrb.mxu3 %vm871_vm1, %v572_v60  ;;  %v614_v21 = vsel %vm171_vm0, %v598_v8, %v613_v10  ;;  %v348_v63 = vsel %vm171_vm0, %v2081_v20, %v2079_v19  ;;  %v312_v22 = vperm.slane %v306_v61, %v1970_v2  ;;  %v329_v23 = vrot.slane %v324_v11, 4  ;;  %133 = vmatpush.msra.mxu2 %v120_v15  ;;  %v114_v10 = vld [vmem:[%s2563_s4 + $0x18] sm:$0xff]  ;;  %v112_v15 = vld [vmem:[%s2563_s4 + $0x8] sm:$0xff] }
 0x146   :  { %v622_v24 = vperm.slane %v614_v21, %v1970_v2  ;;  %v319_v27 = vrot.slane %v2147_v49, 4  ;;  %v602_v62 = vsel %vm171_vm0, %v587_v18, %v601_v14  ;;  %v611_v29 = vrot.slane %v598_v8, 4 }
 0x147   :  { %v280_v30 = vsel %vm171_vm0, 0.0, %v279_v37  ;;  %v330_v31 = vsel %vm171_vm0, %v329_v23, %v312_v22  ;;  %v574_v19 = vsel %vm171_vm0, %v573_v12, %v2153_v56  ;;  %v610_v20 = vperm.slane %v602_v62, %v1970_v2  ;;  %134 = vmatpush.msra.mxu2 %v119_v26  ;;  %v113_v12 = vld [vmem:[%s2563_s4 + $0x10] sm:$0xff] }
 0x148   :  { %v627_v35 = vrot.slane %v622_v24, 4  ;;  %1663 = vmatmul.msk.f32.vlgmr.msra.gmra.mxu3 %vm871_vm1, %v330_v31  ;;  %v343_v36 = vsel %vm171_vm0, %v342_v16, %v2094_v39  ;;  %v2209_v38 = vperm.slane %v348_v63, %v1959_v53  ;;  %v354_v41 = vsel %vm171_vm0, %v353_v17, %v280_v30 }
 0x149   :  { %v361_v37 = vrot.slane %v2135_v48, 4  ;;  %1666 = vmatpush.xpose.msk.msra.mxu3 %vm871_vm1, %v574_v19  ;;  %v629_v43 = vrot.slane %v610_v20, 4  ;;  %v2219_v45 = vperm.slane %v343_v36, %v1959_v53  ;;  %v358_v39 = vperm.slane %v354_v41, %v1959_v53  ;;  %135 = vmatpush.msra.mxu2 %v118_v40 }
 0x14a   :  { %v628_v42 = vsel %vm171_vm0, %v627_v35, %v610_v20  ;;  %v373_v46 = vrot.slane %v2209_v38, 4  ;;  %v331_v28 = vrot.slane %v312_v22, 4  ;;  %v575_v60 = vrot.slane %v2153_v56, 4 }
 0x14b   :  { %1674 = vmatpush.xpose.msk.msrb.mxu0 %vm871_vm1, %v628_v42  ;;  %v630_v50 = vsel %vm171_vm0, %v622_v24, %v629_v43  ;;  %v362_v32 = vsel %vm171_vm0, %v2219_v45, %v361_v37  ;;  %v320_v49 = vsel %vm171_vm0, %v2139_v1, %v319_v27  ;;  %v599_v55 = vrot.slane %v587_v18, 4  ;;  %136 = vmatpush.msra.mxu2 %v117_v47  ;;  %v115_v1 = vld [vmem:[%s2563_s4 + $0x20] sm:$0xff] }
 0x14c   :  { %1676 = vmatpush.xpose.msk.msrb.mxu1 %vm871_vm1, %v630_v50  ;;  %v370_v51 = vperm.slane %v362_v32, %v1970_v2  ;;  %v374_v5 = vsel %vm171_vm0, %v358_v39, %v373_v46  ;;  %v612_v58 = vsel %vm171_vm0, %v611_v29, %v2090_v25  ;;  %v307_v56 = vrot.slane %v2144_v9, 4 }
 0x14d   :  { %v382_v44 = vperm.slane %v374_v5, %v1970_v2  ;;  %v332_v6 = vsel %vm171_vm0, %v324_v11, %v331_v28  ;;  %v328_v57 = vperm.slane %v320_v49, %v1970_v2  ;;  %137 = vmatpush.msra.mxu2 %v116_v54  ;;  %v576_v61 = vsel %vm171_vm0, %v2161_v59, %v575_v60 }
 0x14e   :  { %v389_v0 = vrot.slane %v370_v51, 4  ;;  %v618_v9 = vperm.slane %v612_v58, %v1970_v2  ;;  %v600_v8 = vsel %vm171_vm0, %v599_v55, %v2165_v3  ;;  %v308_v59 = vsel %vm171_vm0, %v2128_v52, %v307_v56  ;;  %v111_v52 = vld [vmem:[%s2563_s4] sm:$0xff]  ;;  %s1777_s4 = smov 16  }
 0x14f   :  { %v387_v7 = vrot.slane %v382_v44, 4  ;;  %138 = vmatpush.msra.mxu2 %v115_v1  ;;  %v333_v11 = vrot.slane %v328_v57, 4  ;;  %v606_v13 = vperm.slane %v600_v8, %v1970_v2  ;;  %v316_v3 = vperm.slane %v308_v59, %v1970_v2 }
 0x150   :  { %1665 = vmatmul.msk.f32.vlgmr.msrb.gmra.mxu3 %vm871_vm1, %v332_v6  ;;  %v390_v25 = vsel %vm171_vm0, %v382_v44, %v389_v0  ;;  %v623_v14 = vrot.slane %v618_v9, 4  ;;  %v371_v17 = vrot.slane %v358_v39, 4  ;;  %v359_v63 = vrot.slane %v2219_v45, 4 }
 0x151   :  { %1668 = vmatpush.xpose.msk.msrb.mxu3 %vm871_vm1, %v576_v61  ;;  %v388_v4 = vsel %vm171_vm0, %v387_v7, %v370_v51  ;;  %1677 = vmatmul.msk.f32.vlgmr.msrb.gmra.mxu1 %vm871_vm1, %v390_v25  ;;  %v334_v16 = vsel %vm171_vm0, %v333_v11, %v316_v3  ;;  %v335_v21 = vrot.slane %v316_v3, 4  ;;  %v625_v22 = vrot.slane %v606_v13, 4 }
 0x152   :  { %1675 = vmatmul.msk.f32.vlgmr.msrb.gmra.mxu0 %vm871_vm1, %v388_v4  ;;  %139 = vmatpush.msra.mxu2 %v114_v10  ;;  %v624_v18 = vsel %vm171_vm0, %v623_v14, %v606_v13  ;;  %v372_v23 = vsel %vm171_vm0, %v371_v17, %v2209_v38  ;;  %v360_v62 = vsel %vm171_vm0, %v359_v63, %v2135_v48 }
 0x153   :  { %v336_v24 = vsel %vm171_vm0, %v328_v57, %v335_v21  ;;  %v378_v26 = vperm.slane %v372_v23, %v1970_v2  ;;  %v626_v27 = vsel %vm171_vm0, %v618_v9, %v625_v22 }
 0x154   :  { %140 = vmatpush.msra.mxu2 %v113_v12 }
 0x155   :  { %v383_v29 = vrot.slane %v378_v26, 4 }
 0x156   :  { %141 = vmatpush.msra.mxu2 %v112_v15 }
 0x158   :  { %1667 = vmatmul.msk.f32.vlgmr.msra.gmra.mxu3 %vm871_vm1, %v334_v16  ;;  %142 = vmatpush.msra.mxu2 %v111_v52 }
 0x159   :  { %1670 = vmatpush.xpose.msk.msra.mxu3 %vm871_vm1, %v624_v18  ;;  %143 = vmatmul.f32.vlgmr.msra.gmra.mxu2 %v1924_v33  ;;  %v366_v33 = vperm.slane %v360_v62, %v1970_v2 }
 0x15b   :  { %v384_v30 = vsel %vm171_vm0, %v383_v29, %v366_v33  ;;  %v385_v31 = vrot.slane %v366_v33, 4 }
 0x15d   :  { %v386_v19 = vsel %vm171_vm0, %v378_v26, %v385_v31 }
 0x160   :  { %1669 = vmatmul.msk.f32.vlgmr.msrb.gmra.mxu3 %vm871_vm1, %v336_v24 }
 0x161   :  { %1672 = vmatpush.xpose.msk.msrb.mxu3 %vm871_vm1, %v626_v27  ;;  %146 = vmatmul.f32.gmra.mxu2 %v1930_v34 }
 0x168   :  { %1671 = vmatmul.msk.f32.vlgmr.msra.gmra.mxu3 %vm871_vm1, %v384_v30 }
 0x170   :  { %1673 = vmatmul.msk.f32.vlgmr.msrb.gmra.mxu3 %vm871_vm1, %v386_v19 }
 0x1cb   :  { %v895_v20 = vpop.f32.mrf.mxu3 }
 0x1cc   :  { %v1080_v35 = vsel %vm871_vm1, %v895_v20, -inf }
 0x1cd   :  { %1081 = vmax.xlane.f32.xlu0 %v1080_v35 }
 0x1ce   :  { %v2297_v36 = vpop.f32.mrf.mxu1 }
 0x1cf   :  { %v1051_v48 = vpop.f32.mrf.mxu0  ;;  %v1101_v34 = vsel %vm871_vm1, %v2297_v36, -inf }
 0x1d0   :  { %v1098_v38 = vsel %vm871_vm1, %v1051_v48, -inf }
 0x1d1   :  { %1099 = vmax.xlane.f32.xlu2 %v1098_v38 }
 0x1d3   :  { %v921_v41 = vpop.f32.mrf.mxu3 }
 0x1d4   :  { %v1083_v37 = vsel %vm871_vm1, %v921_v41, -inf }
 0x1d5   :  { %1084 = vmax.xlane.f32.xlu1 %v1083_v37  ;;  %1102 = vmax.xlane.f32.xlu0 %v1101_v34 }
 0x1db   :  { %v947_v40 = vpop.f32.mrf.mxu3 }
 0x1dc   :  { %v1086_v42 = vsel %vm871_vm1, %v947_v40, -inf  ;;  %v2306_v47 = vpop.f32.mrf.mxu2 }
 0x1dd   :  { %1087 = vmax.xlane.f32.xlu2 %v1086_v42 }
 0x1e3   :  { %v973_v43 = vpop.f32.mrf.mxu3 }
 0x1e4   :  { %v1089_v45 = vsel %vm871_vm1, %v973_v43, -inf  ;;  %v2309_v32 = vpop.f32.mrf.mxu2 }
 0x1e5   :  { %1090 = vmax.xlane.f32.xlu2 %v1089_v45  ;;  %v1703_v60 = vpack.i.bf16 %v2309_v32, %v2306_v47  ;;  %v709_v34 = vrot.slane %v2309_v32, 4 }
 0x1eb   :  { %v999_v39 = vpop.f32.mrf.mxu3 }
 0x1ec   :  { %v1092_v46 = vsel %vm871_vm1, %v999_v39, -inf }
 0x1ed   :  { %1093 = vmax.xlane.f32.xlu0 %v1092_v46 }
 0x1f3   :  { %v1025_v50 = vpop.f32.mrf.mxu3 }
 0x1f4   :  { %v1095_v28 = vsel %vm871_vm1, %v1025_v50, -inf }
 0x1f5   :  { %1096 = vmax.xlane.f32.xlu1 %v1095_v28 }
 0x1fd   :  { %1704 = vrot.lane.b32.xlu2 %v1703_v60, %s1774_s27 }
 0x201   :  { %1709 = vrot.lane.b32.xlu0 %v1703_v60, %s1772_s25  ;;  %s1778_s25 = smov 24  }
 0x20e   :  { %1699 = vrot.lane.b32.xlu1 %v1703_v60, %s1773_s26  ;;  %s1779_s26 = smov 8  }
 0x240   :  { %v1082_v51 = vpop.xlane.xlu0 %1081 }
 0x241   :  { %v1104_v5 = vsub.f32 %v895_v20, %v1082_v51 }
 0x243   :  { %v1112_v49 = vmul.f32 1.442695, %v1104_v5 }
 0x244   :  { %v1100_v54 = vpop.xlane.xlu2 %1099 }
 0x245   :  { %1714 = vpow2.f32 %v1112_v49  ;;  %v1110_v10 = vsub.f32 %v1051_v48, %v1100_v54 }
 0x247   :  { %v1124_v12 = vmul.f32 1.442695, %v1110_v10 }
 0x248   :  { %v1085_v55 = vpop.xlane.xlu1 %1084  ;;  %v1103_v25 = vpop.xlane.xlu0 %1102 }
 0x249   :  { %v1105_v44 = vsub.f32 %v921_v41, %v1085_v55  ;;  %v1111_v15 = vsub.f32 %v2297_v36, %v1103_v25  ;;  %v653_v41 = vrot.slane %v2306_v47, 4 }
 0x24b   :  { %v2316_v58 = vpop.eup %1714  ;;  %v1114_v56 = vmul.f32 1.442695, %v1105_v44  ;;  %v1126_v17 = vmul.f32 1.442695, %v1111_v15 }
 0x24c   :  { %v1128_v0 = vsel %vm871_vm1, %v2316_v58, 0.0 }
 0x24d   :  { %1716 = vpow2.f32 %v1114_v56  ;;  %1129 = vadd.xlane.f32.xlu1 %v1128_v0 }
 0x250   :  { %v1088_v6 = vpop.xlane.xlu2 %1087 }
 0x251   :  { %v1106_v7 = vsub.f32 %v947_v40, %v1088_v6 }
 0x253   :  { %v2320_v57 = vpop.eup %1716  ;;  %v1116_v1 = vmul.f32 1.442695, %v1106_v7 }
 0x254   :  { %v1131_v61 = vsel %vm871_vm1, %v2320_v57, 0.0 }
 0x255   :  { %1718 = vpow2.f32 %v1116_v1  ;;  %1132 = vadd.xlane.f32.xlu0 %v1131_v61 }
 0x258   :  { %v1091_v9 = vpop.xlane.xlu2 %1090 }
 0x259   :  { %v1107_v4 = vsub.f32 %v973_v43, %v1091_v9 }
 0x25b   :  { %v2324_v8 = vpop.eup %1718  ;;  %v1118_v59 = vmul.f32 1.442695, %v1107_v4 }
 0x25c   :  { %v1134_v11 = vsel %vm871_vm1, %v2324_v8, 0.0 }
 0x25d   :  { %1720 = vpow2.f32 %v1118_v59  ;;  %1135 = vadd.xlane.f32.xlu2 %v1134_v11 }
 0x25e   :  { %1722 = vpow2.f32 %v1124_v12 }
 0x260   :  { %v1094_v13 = vpop.xlane.xlu0 %1093  ;;  %v1705_v62 = vpop.permute.xlu2 %1704 }
 0x261   :  { %v1108_v14 = vsub.f32 %v999_v39, %v1094_v13  ;;  %v1707_v30 = vunpack.i.h.bf16 %v1705_v62  ;;  %v1706_v31 = vunpack.i.l.bf16 %v1705_v62 }
 0x263   :  { %v2328_v3 = vpop.eup %1720  ;;  %v1120_v16 = vmul.f32 1.442695, %v1108_v14  ;;  %v707_v35 = vrot.slane %v1707_v30, 4  ;;  %v651_v48 = vrot.slane %v1706_v31, 4  ;;  %v710_v40 = vsel %vm171_vm0, %v1707_v30, %v709_v34 }
 0x264   :  { %v1137_v52 = vsel %vm871_vm1, %v2328_v3, 0.0  ;;  %v2333_v21 = vpop.eup %1722  ;;  %v654_v43 = vsel %vm171_vm0, %v1706_v31, %v653_v41  ;;  %v718_v28 = vperm.slane %v710_v40, %v1959_v53 }
 0x265   :  { %1138 = vadd.xlane.f32.xlu1 %v1137_v52  ;;  %1724 = vpow2.f32 %v1120_v16  ;;  %v1146_v23 = vsel %vm871_vm1, %v2333_v21, 0.0  ;;  %v708_v37 = vsel %vm171_vm0, %v707_v35, %v2309_v32  ;;  %v652_v42 = vsel %vm171_vm0, %v651_v48, %v2306_v47 }
 0x266   :  { %1726 = vpow2.f32 %v1126_v17  ;;  %v714_v46 = vperm.slane %v708_v37, %v1959_v53  ;;  %v658_v60 = vperm.slane %v652_v42, %v1959_v53  ;;  %v662_v32 = vperm.slane %v654_v43, %v1959_v53 }
 0x267   :  { %v745_v6 = vrot.slane %v718_v28, 4 }
 0x268   :  { %v1097_v18 = vpop.xlane.xlu1 %1096  ;;  %v733_v44 = vrot.slane %v714_v46, 4  ;;  %v677_v7 = vrot.slane %v658_v60, 4  ;;  %v689_v59 = vrot.slane %v662_v32, 4 }
 0x269   :  { %v1109_v63 = vsub.f32 %v1025_v50, %v1097_v18 }
 0x26b   :  { %v1122_v22 = vmul.f32 1.442695, %v1109_v63  ;;  %v2337_v24 = vpop.eup %1724 }
 0x26c   :  { %v1140_v26 = vsel %vm871_vm1, %v2337_v24, 0.0  ;;  %v2341_v27 = vpop.eup %1726 }
 0x26d   :  { %1728 = vpow2.f32 %v1122_v22  ;;  %1147 = vadd.xlane.f32.xlu1 %v1146_v23  ;;  %1141 = vadd.xlane.f32.xlu0 %v1140_v26  ;;  %v1149_v19 = vsel %vm871_vm1, %v2341_v27, 0.0 }
 0x273   :  { %v2343_v33 = vpop.eup %1728  ;;  %v1710_v20 = vpop.permute.xlu0 %1709 }
 0x274   :  { %v1143_v29 = vsel %vm871_vm1, %v2343_v33, 0.0  ;;  %v1712_v36 = vunpack.i.h.bf16 %v1710_v20  ;;  %v1711_v38 = vunpack.i.l.bf16 %v1710_v20 }
 0x275   :  { %1144 = vadd.xlane.f32.xlu2 %v1143_v29  ;;  %1150 = vadd.xlane.f32.xlu0 %v1149_v19 }
 0x276   :  { %v719_v45 = vrot.slane %v1712_v36, 4  ;;  %v663_v39 = vrot.slane %v1711_v38, 4 }
 0x280   :  { %v1700_v50 = vpop.permute.xlu1 %1699 }
 0x281   :  { %v1702_v51 = vunpack.i.h.bf16 %v1700_v50  ;;  %v1701_v5 = vunpack.i.l.bf16 %v1700_v50 }
 0x283   :  { %v720_v49 = vsel %vm171_vm0, %v719_v45, %v1702_v51  ;;  %v721_v54 = vrot.slane %v1702_v51, 4  ;;  %v664_v47 = vsel %vm171_vm0, %v663_v39, %v1701_v5  ;;  %v665_v55 = vrot.slane %v1701_v5, 4 }
 0x284   :  { %v726_v56 = vperm.slane %v720_v49, %v1959_v53  ;;  %v670_v0 = vperm.slane %v664_v47, %v1959_v53 }
 0x285   :  { %v722_v1 = vsel %vm171_vm0, %v1712_v36, %v721_v54  ;;  %v666_v61 = vsel %vm171_vm0, %v1711_v38, %v665_v55 }
 0x286   :  { %v730_v25 = vperm.slane %v722_v1, %v1959_v53  ;;  %v731_v9 = vrot.slane %v726_v56, 4  ;;  %v734_v4 = vsel %vm171_vm0, %v726_v56, %v733_v44  ;;  %v674_v10 = vperm.slane %v666_v61, %v1959_v53 }
 0x287   :  { %v742_v11 = vperm.slane %v734_v4, %v1970_v2  ;;  %v675_v12 = vrot.slane %v670_v0, 4  ;;  %v678_v13 = vsel %vm171_vm0, %v670_v0, %v677_v7 }
 0x288   :  { %v732_v14 = vsel %vm171_vm0, %v731_v9, %v714_v46  ;;  %v743_v15 = vrot.slane %v730_v25, 4  ;;  %v746_v16 = vsel %vm171_vm0, %v730_v25, %v745_v6  ;;  %v686_v52 = vperm.slane %v678_v13, %v1970_v2 }
 0x289   :  { %v738_v17 = vperm.slane %v732_v14, %v1970_v2  ;;  %v754_v18 = vperm.slane %v746_v16, %v1970_v2  ;;  %v757_v63 = vrot.slane %v742_v11, 4  ;;  %v676_v22 = vsel %vm171_vm0, %v675_v12, %v658_v60 }
 0x28a   :  { %v744_v23 = vsel %vm171_vm0, %v743_v15, %v718_v28  ;;  %v682_v26 = vperm.slane %v676_v22, %v1970_v2  ;;  %v687_v62 = vrot.slane %v674_v10, 4  ;;  %v690_v29 = vsel %vm171_vm0, %v674_v10, %v689_v59 }
 0x28b   :  { %v750_v30 = vperm.slane %v744_v23, %v1970_v2  ;;  %v755_v31 = vrot.slane %v738_v17, 4  ;;  %v758_v19 = vsel %vm171_vm0, 0.0, %v757_v63  ;;  %v761_v20 = vrot.slane %v754_v18, 4 }
 0x28c   :  { %v817_v35 = vsel %vm171_vm0, %v757_v63, %v738_v17  ;;  %v822_v48 = vrot.slane %v758_v19, 4  ;;  %v688_v36 = vsel %vm171_vm0, %v687_v62, %v662_v32  ;;  %v698_v38 = vperm.slane %v690_v29, %v1970_v2 }
 0x28d   :  { %v762_v34 = vsel %vm171_vm0, 0.0, %v761_v20  ;;  %v694_v41 = vperm.slane %v688_v36, %v1970_v2  ;;  %v699_v37 = vrot.slane %v682_v26, 4  ;;  %v701_v40 = vrot.slane %v686_v52, 4 }
 0x28e   :  { %v833_v42 = vrot.slane %v762_v34, 4  ;;  %v705_v43 = vrot.slane %v698_v38, 4  ;;  %v756_v45 = vsel %vm171_vm0, 0.0, %v755_v31  ;;  %v759_v39 = vrot.slane %v750_v30, 4 }
 0x28f   :  { %v702_v46 = vsel %vm171_vm0, 0.0, %v701_v40  ;;  %v763_v50 = vsel %vm171_vm0, %v701_v40, %v682_v26  ;;  %v700_v28 = vsel %vm171_vm0, 0.0, %v699_v37  ;;  %v703_v60 = vrot.slane %v694_v41, 4 }
 0x290   :  { %v706_v51 = vsel %vm171_vm0, 0.0, %v705_v43  ;;  %v768_v5 = vrot.slane %v702_v46, 4  ;;  %v767_v32 = vperm.slane %v763_v50, %v1959_v53  ;;  %v774_v49 = vsel %vm171_vm0, %v705_v43, %v694_v41 }
 0x291   :  { %v779_v54 = vrot.slane %v706_v51, 4  ;;  %v704_v47 = vsel %vm171_vm0, 0.0, %v703_v60  ;;  %v778_v55 = vperm.slane %v774_v49, %v1959_v53  ;;  %v760_v44 = vsel %vm171_vm0, 0.0, %v759_v39 }
 0x292   :  { %v769_v56 = vsel %vm171_vm0, %v768_v5, %v700_v28  ;;  %v787_v0 = vrot.slane %v767_v32, 4  ;;  %v821_v6 = vperm.slane %v817_v35, %v1959_v53  ;;  %v823_v7 = vsel %vm171_vm0, %v822_v48, %v756_v45 }
 0x293   :  { %v773_v1 = vperm.slane %v769_v56, %v1959_v53  ;;  %v780_v61 = vsel %vm171_vm0, %v779_v54, %v704_v47  ;;  %v799_v25 = vrot.slane %v778_v55, 4  ;;  %v827_v9 = vperm.slane %v823_v7, %v1959_v53 }
 0x294   :  { %v784_v4 = vperm.slane %v780_v61, %v1959_v53  ;;  %v828_v10 = vsel %vm171_vm0, %v761_v20, %v750_v30  ;;  %v834_v59 = vsel %vm171_vm0, %v833_v42, %v760_v44  ;;  %v841_v11 = vrot.slane %v821_v6, 4 }
 0x295   :  { %v788_v12 = vsel %vm171_vm0, %v773_v1, %v787_v0  ;;  %v832_v13 = vperm.slane %v828_v10, %v1959_v53  ;;  %v838_v14 = vperm.slane %v834_v59, %v1959_v53  ;;  %v785_v15 = vrot.slane %v773_v1, 4 }
 0x296   :  { %v796_v16 = vperm.slane %v788_v12, %v1970_v2  ;;  %v800_v52 = vsel %vm171_vm0, %v784_v4, %v799_v25  ;;  %v842_v17 = vsel %vm171_vm0, %v827_v9, %v841_v11  ;;  %v797_v18 = vrot.slane %v784_v4, 4 }
 0x297   :  { %v808_v63 = vperm.slane %v800_v52, %v1970_v2  ;;  %v850_v22 = vperm.slane %v842_v17, %v1970_v2  ;;  %v853_v23 = vrot.slane %v832_v13, 4  ;;  %v786_v26 = vsel %vm171_vm0, %v785_v15, %v767_v32 }
 0x298   :  { %v815_v62 = vrot.slane %v796_v16, 4  ;;  %v792_v29 = vperm.slane %v786_v26, %v1970_v2  ;;  %v798_v30 = vsel %vm171_vm0, %v797_v18, %v778_v55  ;;  %v839_v31 = vrot.slane %v827_v9, 4 }
 0x299   :  { %v854_v19 = vsel %vm171_vm0, %v838_v14, %v853_v23  ;;  %v869_v20 = vrot.slane %v850_v22, 4  ;;  %v813_v35 = vrot.slane %v808_v63, 4  ;;  %v804_v48 = vperm.slane %v798_v30, %v1970_v2 }
 0x29a   :  { %v816_v36 = vsel %vm171_vm0, %v808_v63, %v815_v62  ;;  %v862_v38 = vperm.slane %v854_v19, %v1970_v2  ;;  %v851_v34 = vrot.slane %v838_v14, 4  ;;  %v811_v40 = vrot.slane %v792_v29, 4 }
 0x29b   :  { %1255 = vmatpush.msra.mxu1 %v816_v36  ;;  %v814_v41 = vsel %vm171_vm0, %v813_v35, %v796_v16  ;;  %v809_v37 = vrot.slane %v804_v48, 4  ;;  %v840_v45 = vsel %vm171_vm0, %v839_v31, %v821_v6 }
 0x29c   :  { %v870_v42 = vsel %vm171_vm0, %v862_v38, %v869_v20  ;;  %1232 = vmatpush.msra.mxu0 %v814_v41  ;;  %v867_v43 = vrot.slane %v862_v38, 4  ;;  %v852_v39 = vsel %vm171_vm0, %v851_v34, %v832_v13  ;;  %v812_v60 = vsel %vm171_vm0, %v804_v48, %v811_v40 }
 0x29d   :  { %1347 = vmatpush.msrb.mxu1 %v870_v42  ;;  %v810_v46 = vsel %vm171_vm0, %v809_v37, %v792_v29  ;;  %v858_v50 = vperm.slane %v852_v39, %v1970_v2  ;;  %v846_v51 = vperm.slane %v840_v45, %v1970_v2 }
 0x29e   :  { %v868_v28 = vsel %vm171_vm0, %v867_v43, %v850_v22  ;;  %1186 = vmatpush.msra.mxu3 %v810_v46 }
 0x29f   :  { %1324 = vmatpush.msrb.mxu0 %v868_v28  ;;  %v863_v5 = vrot.slane %v858_v50, 4  ;;  %v865_v54 = vrot.slane %v846_v51, 4 }
 0x2a0   :  { %1209 = vmatpush.msrb.mxu3 %v812_v60 }
 0x2a1   :  { %v864_v32 = vsel %vm171_vm0, %v863_v5, %v846_v51  ;;  %v866_v56 = vsel %vm171_vm0, %v858_v50, %v865_v54 }
 0x2a2   :  { %1278 = vmatpush.msrb.mxu2 %v864_v32 }
 0x2c0   :  { %v1130_v49 = vpop.xlane.xlu1 %1129 }
 0x2c1   :  { %1730 = vrcp.f32 %v1130_v49 }
 0x2c7   :  { %v1731_v47 = vpop.eup %1730 }
 0x2c8   :  { %v1160_v55 = vmul.f32 %v1731_v47, %v2316_v58  ;;  %v1133_v44 = vpop.xlane.xlu0 %1132 }
 0x2c9   :  { %1732 = vrcp.f32 %v1133_v44 }
 0x2ca   :  { %1678 = vmatmul.msk.f32.vlgmr.msra.gmra.mxu3 %vm871_vm1, %v1160_v55 }
 0x2cb   :  { %1301 = vmatpush.msra.mxu3 %v866_v56 }
 0x2cf   :  { %v1733_v0 = vpop.eup %1732 }
 0x2d0   :  { %v1161_v6 = vmul.f32 %v1733_v0, %v2320_v57  ;;  %v1136_v7 = vpop.xlane.xlu2 %1135 }
 0x2d1   :  { %1734 = vrcp.f32 %v1136_v7 }
 0x2d2   :  { %1679 = vmatmul.msk.f32.vlgmr.msrb.gmra.mxu3 %vm871_vm1, %v1161_v6 }
 0x2d7   :  { %v1735_v1 = vpop.eup %1734 }
 0x2d8   :  { %v1162_v61 = vmul.f32 %v1735_v1, %v2324_v8  ;;  %v1139_v25 = vpop.xlane.xlu1 %1138 }
 0x2d9   :  { %1736 = vrcp.f32 %v1139_v25 }
 0x2da   :  { %1680 = vmatmul.msk.f32.vlgmr.msra.gmra.mxu0 %vm871_vm1, %v1162_v61 }
 0x2df   :  { %v1737_v58 = vpop.eup %1736 }
 0x2e0   :  { %v1163_v9 = vmul.f32 %v1737_v58, %v2328_v3  ;;  %v1148_v4 = vpop.xlane.xlu1 %1147  ;;  %v1142_v10 = vpop.xlane.xlu0 %1141 }
 0x2e1   :  { %1738 = vrcp.f32 %v1148_v4 }
 0x2e2   :  { %1681 = vmatmul.msk.f32.vlgmr.msra.gmra.mxu1 %vm871_vm1, %v1163_v9  ;;  %1740 = vrcp.f32 %v1142_v10 }
 0x2e7   :  { %v1739_v57 = vpop.eup %1738 }
 0x2e8   :  { %v1166_v59 = vmul.f32 %v1739_v57, %v2333_v21  ;;  %v1145_v11 = vpop.xlane.xlu2 %1144  ;;  %v1741_v12 = vpop.eup %1740 }
 0x2e9   :  { %1742 = vrcp.f32 %v1145_v11  ;;  %v1151_v8 = vpop.xlane.xlu0 %1150  ;;  %v1164_v13 = vmul.f32 %v1741_v12, %v2337_v24 }
 0x2ea   :  { %1684 = vmatmul.msk.f32.vlgmr.msrb.gmra.mxu0 %vm871_vm1, %v1166_v59  ;;  %1744 = vrcp.f32 %v1151_v8 }
 0x2eb   :  { %1682 = vmatmul.msk.f32.vlgmr.msrb.gmra.mxu2 %vm871_vm1, %v1164_v13 }
 0x2ef   :  { %v1743_v3 = vpop.eup %1742 }
 0x2f0   :  { %v1165_v14 = vmul.f32 %v1743_v3, %v2343_v33  ;;  %v1745_v15 = vpop.eup %1744 }
 0x2f1   :  { %v1167_v16 = vmul.f32 %v1745_v15, %v2341_v27 }
 0x2f2   :  { %1683 = vmatmul.msk.f32.vlgmr.msra.gmra.mxu3 %vm871_vm1, %v1165_v14 }
 0x2f3   :  { %1685 = vmatmul.msk.f32.vlgmr.msrb.gmra.mxu1 %vm871_vm1, %v1167_v16 }
 0x34d   :  { %v1188_v21 = vpop.f32.mrf.mxu3 }
 0x34e   :  { %v1354_v17 = vrot.slane %v1188_v21, 4 }
 0x355   :  { %v1211_v63 = vpop.f32.mrf.mxu3 }
 0x356   :  { %v1366_v26 = vrot.slane %v1211_v63, 4 }
 0x357   :  { %v1234_v52 = vpop.f32.mrf.mxu0 }
 0x358   :  { %v1352_v18 = vrot.slane %v1234_v52, 4  ;;  %v1355_v24 = vsel %vm171_vm0, %v1234_v52, %v1354_v17 }
 0x359   :  { %v1363_v23 = vperm.slane %v1355_v24, %v1959_v53 }
 0x35a   :  { %v1353_v22 = vsel %vm171_vm0, %v1352_v18, %v1188_v21 }
 0x35b   :  { %v1359_v33 = vperm.slane %v1353_v22, %v1959_v53  ;;  %v1390_v30 = vrot.slane %v1363_v23, 4 }
 0x35d   :  { %v1378_v20 = vrot.slane %v1359_v33, 4 }
 0x35f   :  { %v1257_v62 = vpop.f32.mrf.mxu1 }
 0x360   :  { %v1364_v27 = vrot.slane %v1257_v62, 4  ;;  %v1367_v29 = vsel %vm171_vm0, %v1257_v62, %v1366_v26 }
 0x361   :  { %v1375_v31 = vperm.slane %v1367_v29, %v1959_v53 }
 0x362   :  { %v1365_v19 = vsel %vm171_vm0, %v1364_v27, %v1211_v63 }
 0x363   :  { %v1371_v35 = vperm.slane %v1365_v19, %v1959_v53  ;;  %v1388_v48 = vrot.slane %v1375_v31, 4  ;;  %v1391_v36 = vsel %vm171_vm0, %v1375_v31, %v1390_v30 }
 0x364   :  { %v1399_v38 = vperm.slane %v1391_v36, %v1970_v2 }
 0x365   :  { %v1376_v34 = vrot.slane %v1371_v35, 4  ;;  %v1379_v41 = vsel %vm171_vm0, %v1371_v35, %v1378_v20  ;;  %v1389_v37 = vsel %vm171_vm0, %v1388_v48, %v1363_v23 }
 0x366   :  { %v1387_v40 = vperm.slane %v1379_v41, %v1970_v2  ;;  %v1395_v42 = vperm.slane %v1389_v37, %v1970_v2  ;;  %v1406_v43 = vrot.slane %v1399_v38, 4 }
 0x367   :  { %v1377_v45 = vsel %vm171_vm0, %v1376_v34, %v1359_v33  ;;  %v1326_v47 = vpop.f32.mrf.mxu0 }
 0x368   :  { %v1383_v39 = vperm.slane %v1377_v45, %v1970_v2  ;;  %v1402_v46 = vrot.slane %v1387_v40, 4  ;;  %v1404_v50 = vrot.slane %v1395_v42, 4  ;;  %v1407_v28 = vsel %vm171_vm0, 0.0, %v1406_v43 }
 0x369   :  { %v1475_v60 = vsel %vm171_vm0, %v1406_v43, %v1395_v42  ;;  %v1480_v51 = vrot.slane %v1407_v28, 4  ;;  %v1408_v61 = vrot.slane %v1326_v47, 4 }
 0x36a   :  { %v1400_v5 = vrot.slane %v1383_v39, 4  ;;  %v1403_v32 = vsel %vm171_vm0, 0.0, %v1402_v46  ;;  %v1405_v49 = vsel %vm171_vm0, 0.0, %v1404_v50  ;;  %v1479_v54 = vperm.slane %v1475_v60, %v1959_v53 }
 0x36b   :  { %v1469_v55 = vrot.slane %v1403_v32, 4  ;;  %v1464_v44 = vsel %vm171_vm0, %v1402_v46, %v1383_v39  ;;  %v1481_v56 = vsel %vm171_vm0, %v1480_v51, %v1405_v49 }
 0x36c   :  { %v1401_v0 = vsel %vm171_vm0, 0.0, %v1400_v5  ;;  %v1468_v6 = vperm.slane %v1464_v44, %v1959_v53  ;;  %v1485_v7 = vperm.slane %v1481_v56, %v1959_v53  ;;  %v1500_v1 = vrot.slane %v1479_v54, 4 }
 0x36d   :  { %v1470_v25 = vsel %vm171_vm0, %v1469_v55, %v1401_v0 }
 0x36e   :  { %v1474_v58 = vperm.slane %v1470_v25, %v1959_v53  ;;  %v1488_v9 = vrot.slane %v1468_v6, 4  ;;  %v1501_v4 = vsel %vm171_vm0, %v1485_v7, %v1500_v1  ;;  %v1498_v10 = vrot.slane %v1485_v7, 4  ;;  %v1280_v57 = vpop.f32.mrf.mxu2 }
 0x36f   :  { %v1509_v59 = vperm.slane %v1501_v4, %v1970_v2  ;;  %v1409_v11 = vsel %vm171_vm0, %v1408_v61, %v1280_v57  ;;  %v1410_v12 = vrot.slane %v1280_v57, 4 }
 0x370   :  { %v1489_v8 = vsel %vm171_vm0, %v1474_v58, %v1488_v9  ;;  %v1486_v13 = vrot.slane %v1474_v58, 4  ;;  %v1349_v3 = vpop.f32.mrf.mxu1  ;;  %v1499_v16 = vsel %vm171_vm0, %v1498_v10, %v1479_v54  ;;  %v1415_v18 = vperm.slane %v1409_v11, %v1959_v53 }
 0x371   :  { %v1497_v14 = vperm.slane %v1489_v8, %v1970_v2  ;;  %v1514_v15 = vrot.slane %v1509_v59, 4  ;;  %v1411_v21 = vsel %vm171_vm0, %v1326_v47, %v1410_v12  ;;  %v1505_v17 = vperm.slane %v1499_v16, %v1970_v2 }
 0x372   :  { %v1487_v52 = vsel %vm171_vm0, %v1486_v13, %v1468_v6  ;;  %v1420_v22 = vrot.slane %v1349_v3, 4  ;;  %v1419_v33 = vperm.slane %v1411_v21, %v1959_v53  ;;  %v1434_v20 = vrot.slane %v1415_v18, 4 }
 0x373   :  { %v1515_v24 = vsel %vm171_vm0, %v1514_v15, %v1497_v14  ;;  %v1516_v63 = vrot.slane %v1497_v14, 4  ;;  %v1493_v23 = vperm.slane %v1487_v52, %v1970_v2  ;;  %v1510_v26 = vrot.slane %v1505_v17, 4 }
 0x374   :  { %1582 = vrot.lane.b32.xlu1 %v1515_v24, %s1777_s4  ;;  %v1446_v38 = vrot.slane %v1419_v33, 4 }
 0x375   :  { %v1303_v62 = vpop.f32.mrf.mxu3  ;;  %v1517_v27 = vsel %vm171_vm0, %v1509_v59, %v1516_v63  ;;  %v1512_v31 = vrot.slane %v1493_v23, 4  ;;  %v2495_v19 = vsel %vm171_vm0, %v1510_v26, %v1493_v23  ;;  %v1607_v23 = vld [vmem:[%s2564_s5 + $0x18] sm:$0xff]  ;;  %v1605_v26 = vld [vmem:[%s2564_s5 + $0x8] sm:$0xff] }
 0x376   :  { %v1421_v29 = vsel %vm171_vm0, %v1420_v22, %v1303_v62  ;;  %v1422_v30 = vrot.slane %v1303_v62, 4  ;;  %1590 = vrot.lane.b32.xlu0 %v1517_v27, %s1778_s25  ;;  %1631 = vmatpush.msra.mxu2 %v1607_v23 }
 0x377   :  { %v1427_v35 = vperm.slane %v1421_v29, %v1959_v53  ;;  %v1513_v36 = vsel %vm171_vm0, %v1505_v17, %v1512_v31 }
 0x378   :  { %v1423_v48 = vsel %vm171_vm0, %v1349_v3, %v1422_v30  ;;  %1574 = vrot.lane.b32.xlu2 %v1513_v36, %s1779_s26 }
 0x379   :  { %v1431_v34 = vperm.slane %v1423_v48, %v1959_v53  ;;  %v1432_v41 = vrot.slane %v1427_v35, 4  ;;  %v1435_v37 = vsel %vm171_vm0, %v1427_v35, %v1434_v20 }
 0x37a   :  { %v1443_v40 = vperm.slane %v1435_v37, %v1970_v2  ;;  %v1713_v37 = vld [vmem:[%s2565_s6] ss:$0 sm:$0xff] }
 0x37b   :  { %v1433_v42 = vsel %vm171_vm0, %v1432_v41, %v1415_v18  ;;  %v1444_v43 = vrot.slane %v1431_v34, 4  ;;  %v1447_v45 = vsel %vm171_vm0, %v1431_v34, %v1446_v38 }
 0x37c   :  { %v1439_v39 = vperm.slane %v1433_v42, %v1970_v2  ;;  %v1455_v46 = vperm.slane %v1447_v45, %v1970_v2  ;;  %v1458_v50 = vrot.slane %v1443_v40, 4 }
 0x37d   :  { %v1445_v28 = vsel %vm171_vm0, %v1444_v43, %v1419_v33  ;;  %v1604_v33 = vld [vmem:[%s2564_s5] sm:$0xff] }
 0x37e   :  { %v1451_v60 = vperm.slane %v1445_v28, %v1970_v2  ;;  %v1456_v51 = vrot.slane %v1439_v39, 4  ;;  %v1459_v5 = vsel %vm171_vm0, 0.0, %v1458_v50  ;;  %v1462_v32 = vrot.slane %v1455_v46, 4 }
 0x37f   :  { %v1518_v49 = vsel %vm171_vm0, %v1458_v50, %v1439_v39  ;;  %v1523_v54 = vrot.slane %v1459_v5, 4 }
 0x380   :  { %v1457_v47 = vsel %vm171_vm0, 0.0, %v1456_v51  ;;  %v1460_v55 = vrot.slane %v1451_v60, 4  ;;  %v1463_v44 = vsel %vm171_vm0, 0.0, %v1462_v32  ;;  %v1522_v56 = vperm.slane %v1518_v49, %v1959_v53 }
 0x381   :  { %v1534_v0 = vrot.slane %v1463_v44, 4  ;;  %v1524_v6 = vsel %vm171_vm0, %v1523_v54, %v1457_v47  ;;  %v1529_v7 = vsel %vm171_vm0, %v1462_v32, %v1451_v60 }
 0x382   :  { %v1461_v1 = vsel %vm171_vm0, 0.0, %v1460_v55  ;;  %v1528_v61 = vperm.slane %v1524_v6, %v1959_v53  ;;  %v1533_v25 = vperm.slane %v1529_v7, %v1959_v53  ;;  %v1542_v58 = vrot.slane %v1522_v56, 4 }
 0x383   :  { %v1535_v9 = vsel %vm171_vm0, %v1534_v0, %v1461_v1 }
 0x384   :  { %v1539_v4 = vperm.slane %v1535_v9, %v1959_v53  ;;  %v1543_v10 = vsel %vm171_vm0, %v1528_v61, %v1542_v58  ;;  %v1554_v57 = vrot.slane %v1533_v25, 4  ;;  %v1540_v59 = vrot.slane %v1528_v61, 4 }
 0x385   :  { %v1551_v11 = vperm.slane %v1543_v10, %v1970_v2 }
 0x386   :  { %v1555_v12 = vsel %vm171_vm0, %v1539_v4, %v1554_v57  ;;  %v1541_v8 = vsel %vm171_vm0, %v1540_v59, %v1522_v56  ;;  %v1552_v13 = vrot.slane %v1539_v4, 4 }
 0x387   :  { %v1563_v3 = vperm.slane %v1555_v12, %v1970_v2  ;;  %v1570_v14 = vrot.slane %v1551_v11, 4  ;;  %v1547_v15 = vperm.slane %v1541_v8, %v1970_v2 }
 0x388   :  { %v1553_v16 = vsel %vm171_vm0, %v1552_v13, %v1533_v25 }
 0x389   :  { %v1571_v53 = vsel %vm171_vm0, %v1563_v3, %v1570_v14  ;;  %v1568_v21 = vrot.slane %v1563_v3, 4  ;;  %v1559_v52 = vperm.slane %v1553_v16, %v1970_v2  ;;  %v1566_v17 = vrot.slane %v1547_v15, 4  ;;  %v1606_v2 = vld [vmem:[%s2564_s5 + $0x10] sm:$0xff] }
 0x38a   :  { %1592 = vrot.lane.b32.xlu1 %v1571_v53, %s1778_s25  ;;  %1632 = vmatpush.msra.mxu2 %v1606_v2 }
 0x38b   :  { %v1569_v18 = vsel %vm171_vm0, %v1568_v21, %v1551_v11  ;;  %v1564_v24 = vrot.slane %v1559_v52, 4  ;;  %v1567_v63 = vsel %vm171_vm0, %v1559_v52, %v1566_v17 }
 0x38c   :  { %1584 = vrot.lane.b32.xlu0 %v1569_v18, %s1777_s4  ;;  %1576 = vrot.lane.b32.xlu2 %v1567_v63, %s1779_s26 }
 0x38d   :  { %v1565_v22 = vsel %vm171_vm0, %v1564_v24, %v1547_v15  ;;  %1633 = vmatpush.msra.mxu2 %v1605_v26 }
 0x38f   :  { %1634 = vmatpush.msra.mxu2 %v1604_v33 }
 0x3d2   :  { %v1575_v62 = vpop.permute.xlu2 %1574 }
 0x3d3   :  { %v1596_v27 = vsel %vm871_vm1, %v2495_v19, %v1575_v62 }
 0x3e6   :  { %v1583_v29 = vpop.permute.xlu1 %1582  ;;  %v1577_v35 = vpop.permute.xlu2 %1576 }
 0x3e7   :  { %v1599_v30 = vsel %vm1598_vm2, %v1596_v27, %v1583_v29  ;;  %v1597_v48 = vsel %vm871_vm1, %v1565_v22, %v1577_v35 }
 0x3e8   :  { %v1591_v31 = vpop.permute.xlu0 %1590 }
 0x3e9   :  { %v1602_v20 = vsel %vm1601_vm3, %v1599_v30, %v1591_v31 }
 0x3ea   :  { %1686 = vmatmul.msk.f32.vlgmr.msra.gmra.mxu2 %vm1612_vm4, %v1602_v20 }
 0x3fc   :  { %v1593_v38 = vpop.permute.xlu1 %1592 }
 0x3fe   :  { %v1585_v36 = vpop.permute.xlu0 %1584 }
 0x3ff   :  { %v1600_v34 = vsel %vm1598_vm2, %v1597_v48, %v1585_v36 }
 0x400   :  { %v1603_v41 = vsel %vm1601_vm3, %v1600_v34, %v1593_v38 }
 0x401   :  { %1687 = vmatmul.msk.f32.gmra.mxu2 %vm1612_vm4, %v1603_v41 }
 0x46d   :  { %v1636_v19 = vpop.f32.mrf.mxu2 }
 0x46e   :  { %v1637_v40 = vadd.f32 %v1713_v37, %v1636_v19 }
 0x470   :  { %1642 = vst [vmem:[#allocation2] sm:$0xff] %v1637_v40 }
 0x484   :  { %v1639_v42 = vpop.f32.mrf.mxu2 }
 0x485   :  { %v1640_v43 = vadd.f32 %v1713_v37, %v1639_v42 }
 0x487   :  { %1643 = vst [vmem:[#allocation2 + $0x8] sm:$0xff] %v1640_v43 }
 0x488   :  { %1656 = dma.vmem_to_hbm [thread:$0]  %s1649_s2, 256, %s1651_s21, [#allocation3], %s1781_s23, %s1781_s23, %s1779_s26  }
 0x489   :  { %1770 = dma.done.wait [#allocation3], 256  }
 0x48a   :  { %1771 = vsyncadd [#allocation3], 4294967040 }
 0x48b   :  { %1661 = vsyncpa [#allocation3], 1 }

</bundles_post_ra>
